<compile_context>
chip_gen: v5e
topology: v5e:2x2
jax: 0.10.0
libtpu: 0.0.40
codegen_flags: <defaults>
</compile_context>

<pallas_src>
import functools

import jax
import jax.numpy as jnp
from jax.experimental import pallas as pl
from jax.experimental.pallas import tpu as pltpu


# ----------------------------------------------------------------------------- kernel
def _ffn_kernel(x_ref, w1_ref, b1_ref, w2_ref, b2_ref, o_ref, acc_ref):
    k = pl.program_id(1)

    @pl.when(k == 0)
    def _init():
        acc_ref[...] = jnp.zeros_like(acc_ref)

    # [tm, D] @ [D, th] -> [tm, th]; cast x to the weight dtype so bf16 weights take the
    # fast bf16 MXU path (avoid silent promotion of w1 to f32). f32 accumulation.
    h = jnp.dot(x_ref[...].astype(w1_ref.dtype), w1_ref[...],
                preferred_element_type=jnp.float32)
    h = jnp.maximum(h + b1_ref[...].astype(jnp.float32), 0.0)      # bias + ReLU (VPU)
    # dropout == identity in eval mode
    acc_ref[...] += jnp.dot(h.astype(w2_ref.dtype), w2_ref[...],
                            preferred_element_type=jnp.float32)

    @pl.when(k == pl.num_programs(1) - 1)
    def _finalize():
        o_ref[...] = (acc_ref[...] + b2_ref[...].astype(jnp.float32)).astype(o_ref.dtype)


# --------------------------------------------------------------------- tile selection
def _vmem_capacity_bytes():
    try:
        return int(pltpu.get_tpu_info().vmem_capacity_bytes)
    except Exception:
        return 64 << 20          # conservative fallback (v7x has the smallest VMEM)


def _vmem_bytes(tm, th, D, H, x_it, w_it, o_it):
    wbuf = 1 if th == H else 2            # resident weights single-buffered, slabs 2x
    return (2 * wbuf * D * th * w_it      # w1 (D, th) + w2 (th, D)
            + wbuf * th * 4 + D * 4       # biases (f32)
            + 2 * tm * D * x_it           # double-buffered x row tiles
            + 2 * tm * D * o_it           # double-buffered output tiles
            + tm * th * 4                 # f32 hidden intermediate h
            + tm * D * 4)                 # f32 accumulator scratch


def _choose_tiles(N, D, H, x_it, w_it, o_it, budget):
    # Row tiles: <=512 keeps the f32 intermediate bounded on v7x; 256-multiples feed the
    # 256x256 MXU (v6e/v7x); 128 is the v5e floor. Prefer >= 2 row tiles so the
    # "parallel" axis can use both v7x TensorCores.
    if N < 128:
        tms = [-(-N // 8) * 8]                                       # one sublane-aligned tile
    else:
        tms = [t for t in (512, 256, 128) if t <= N and -(-N // t) >= 2] or [128]
    # Hidden tiles: resident (th == H) preferred; otherwise lane-aligned exact divisors
    # of H so no garbage hidden units leak into the reduction.
    ths = [H] + [t for t in (4096, 2048, 1024, 512, 256, 128) if t < H and H % t == 0]
    for tm in tms:
        for th in ths:
            if _vmem_bytes(tm, th, D, H, x_it, w_it, o_it) <= budget:
                return tm, th
    return tms[-1], ths[-1]


# ------------------------------------------------------------------------ pallas call
@functools.partial(
    jax.jit,
    static_argnames=("tm", "th", "vmem_limit", "single_buffer", "out_dtype"))
def _ffn_call(x, w1, b1, w2, b2, *, tm, th, vmem_limit, single_buffer, out_dtype):
    N, D = x.shape
    H = w1.shape[1]
    grid = (pl.cdiv(N, tm), pl.cdiv(H, th))        # th == H, or th divides H exactly

    resident = pl.Buffered(1) if single_buffer else None   # DMA'd once, no 2x footprint
    w_mode = resident if th == H else None                  # streamed slabs: double-buffer

    def spec(shape, index_map, mode=None):
        if mode is None:
            return pl.BlockSpec(shape, index_map)
        return pl.BlockSpec(shape, index_map, pipeline_mode=mode)

    in_specs = [
        spec((tm, D), lambda i, k: (i, 0)),              # streamed row tiles
        spec((D, th), lambda i, k: (0, k), w_mode),      # w1 slab
        spec((1, th), lambda i, k: (0, k), w_mode),      # b1 slab
        spec((th, D), lambda i, k: (k, 0), w_mode),      # w2 slab
        spec((1, D), lambda i, k: (0, 0), resident),     # b2 (always resident)
    ]
    out_specs = pl.BlockSpec((tm, D), lambda i, k: (i, 0))

    n_i = pl.cdiv(N, tm)
    n_k = pl.cdiv(H, th)
    w_bytes = (w1.size * w1.dtype.itemsize + w2.size * w2.dtype.itemsize
               + b1.size * b1.dtype.itemsize + b2.size * b2.dtype.itemsize)
    cost = pl.CostEstimate(
        flops=4 * N * D * H,                                   # two matmuls, 2*M*K*N each
        transcendentals=0,
        bytes_accessed=int(x.size * x.dtype.itemsize
                           + (w_bytes if n_k == 1 else n_i * w_bytes)
                           + N * D * out_dtype.itemsize))

    return pl.pallas_call(
        _ffn_kernel,
        out_shape=jax.ShapeDtypeStruct((N, D), out_dtype),
        grid_spec=pltpu.PrefetchScalarGridSpec(
            num_scalar_prefetch=0,
            grid=grid,
            in_specs=in_specs,
            out_specs=out_specs,
            scratch_shapes=[pltpu.VMEM((tm, D), jnp.float32)],   # f32 accumulator
        ),
        compiler_params=pltpu.CompilerParams(
            dimension_semantics=("parallel", "arbitrary"),   # rows across TCs, H reduction
            vmem_limit_bytes=vmem_limit,
        ),
        cost_estimate=cost,
    )(x, w1, b1, w2, b2)


def positionwise_ffn(x, w1, b1, w2, b2, *, block_m=None, block_h=None, out_dtype=None):
    """x: [N, D]; w1: [D, H]; b1: [1, H]; w2: [H, D]; b2: [1, D]."""
    N, D = x.shape
    H = w1.shape[1]
    out_dtype = jnp.dtype(x.dtype if out_dtype is None else out_dtype)
    x_it = jnp.dtype(x.dtype).itemsize
    w_it = jnp.dtype(w1.dtype).itemsize
    o_it = out_dtype.itemsize

    cap = _vmem_capacity_bytes()
    tm, th = _choose_tiles(N, D, H, x_it, w_it, o_it, budget=int(cap * 0.7))
    if block_m is not None:
        tm = block_m
    if block_h is not None:
        th = block_h

    needed = _vmem_bytes(tm, th, D, H, x_it, w_it, o_it)
    vmem_limit = int(min(max(needed + (16 << 20), 32 << 20), cap * 0.9))

    kwargs = dict(tm=tm, th=th, vmem_limit=vmem_limit, out_dtype=out_dtype)
    try:
        return _ffn_call(x, w1, b1, w2, b2, single_buffer=True, **kwargs)
    except Exception:
        # Installed jax rejects pl.Buffered(1): fall back to default double-buffering.
        return _ffn_call(x, w1, b1, w2, b2, single_buffer=False, **kwargs)


# ----------------------------------------------------------------------- param / ref
def xavier_normal(key, shape, gain):
    # shape = (out_features, in_features), PyTorch convention.
    fan_out, fan_in = shape
    std = gain * jnp.sqrt(2.0 / (fan_in + fan_out))
    return std * jax.random.normal(key, shape, dtype=jnp.float32)


def _make_params(key, model_dim, d_hidden):
    k_w1, k_w2 = jax.random.split(key)
    gain = jnp.sqrt(2.0)  # nn.init.calculate_gain('relu')
    # PyTorch Linear weights are [out, in]; transpose for the kernel's x @ W layout.
    w1_pt = xavier_normal(k_w1, (d_hidden, model_dim), gain)   # w_1.weight
    w2_pt = xavier_normal(k_w2, (model_dim, d_hidden), gain)   # w_2.weight
    b1 = jnp.zeros((1, d_hidden), jnp.float32)                 # bias init kept deterministic
    b2 = jnp.zeros((1, model_dim), jnp.float32)
    return w1_pt, b1, w2_pt, b2


def _reference(x2d, w1_pt, b1, w2_pt, b2):
    hi = jax.lax.Precision.HIGHEST
    h = jnp.maximum(jnp.dot(x2d, w1_pt.T, precision=hi) + b1, 0.0)
    return jnp.dot(h, w2_pt.T, precision=hi) + b2


if __name__ == "__main__":
    key = jax.random.PRNGKey(0)
    k_a, k_b, k_c = jax.random.split(key, 3)

    # --- Test 1: lane-aligned dims, ragged token count (partial last row tile) --------
    model_dim, d_hidden = 128, 256
    batch, seq = 2, 125                          # N = 250 -> grid of 2 row tiles (tm=128)
    kx, kp = jax.random.split(k_a)
    w1_pt, b1, w2_pt, b2 = _make_params(kp, model_dim, d_hidden)
    x = jax.random.normal(kx, (batch, seq, model_dim), dtype=jnp.float32)
    x2d = x.reshape(batch * seq, model_dim)

    out2d = positionwise_ffn(x2d, w1_pt.T, b1, w2_pt.T, b2)
    out = out2d.reshape(batch, seq, model_dim)
    jax.block_until_ready(out)

    ref = _reference(x2d, w1_pt, b1, w2_pt, b2)
    assert out2d.shape == ref.shape
    assert jnp.allclose(out2d, ref, atol=2e-2, rtol=2e-2), "mismatch vs reference (test 1)"

    # --- Test 2: original tiny unaligned shapes (full-extent feature blocks) ----------
    model_dim, d_hidden = 16, 32
    batch, seq = 2, 8
    kx, kp = jax.random.split(k_b)
    w1_pt, b1, w2_pt, b2 = _make_params(kp, model_dim, d_hidden)
    x = jax.random.normal(kx, (batch, seq, model_dim), dtype=jnp.float32)
    x2d = x.reshape(batch * seq, model_dim)

    out2d = positionwise_ffn(x2d, w1_pt.T, b1, w2_pt.T, b2)
    jax.block_until_ready(out2d)

    ref = _reference(x2d, w1_pt, b1, w2_pt, b2)
    assert jnp.allclose(out2d, ref, atol=1e-4, rtol=1e-4), "mismatch vs reference (test 2)"

    # --- Test 3: hidden-dim streaming / reduction path (th < H, accumulator grid) -----
    model_dim, d_hidden = 128, 512
    batch, seq = 3, 50                           # N = 150 (ragged) ; grid = (2, 2)
    kx, kp = jax.random.split(k_c)
    w1_pt, b1, w2_pt, b2 = _make_params(kp, model_dim, d_hidden)
    x = jax.random.normal(kx, (batch, seq, model_dim), dtype=jnp.float32)
    x2d = x.reshape(batch * seq, model_dim)

    out2d = positionwise_ffn(x2d, w1_pt.T, b1, w2_pt.T, b2, block_h=256)
    jax.block_until_ready(out2d)

    ref = _reference(x2d, w1_pt, b1, w2_pt, b2)
    assert jnp.allclose(out2d, ref, atol=2e-2, rtol=2e-2), "mismatch vs reference (test 3)"

    print("KERNEL_OK")
</pallas_src>

<mosaic_0001>
module attributes {stable_mosaic.version = 11 : i64} {
  func.func @_ffn_kernel(%arg0: i32, %arg1: i32, %arg2: memref<128x128xf32, #tpu.memory_space<vmem>>, %arg3: memref<128x256xf32, #tpu.memory_space<vmem>>, %arg4: memref<1x256xf32, #tpu.memory_space<vmem>>, %arg5: memref<256x128xf32, #tpu.memory_space<vmem>>, %arg6: memref<1x128xf32, #tpu.memory_space<vmem>>, %arg7: memref<128x128xf32, #tpu.memory_space<vmem>>, %arg8: memref<128x128xf32, #tpu.memory_space<vmem>>) attributes {dimension_semantics = [#tpu.dimension_semantics<parallel>, #tpu.dimension_semantics<arbitrary>], iteration_bounds = array<i64: 2, 1>, scalar_prefetch = 0 : i64, scratch_operands = 1 : i64, tpu.core_type = #tpu.core_type<tc>, window_params = [{transform_indices = @transform_0, window_bounds = array<i64: 128, 128>}, {pipeline_mode = #tpu.pipeline_mode<synchronous>, transform_indices = @transform_1, window_bounds = array<i64: 128, 256>}, {pipeline_mode = #tpu.pipeline_mode<synchronous>, transform_indices = @transform_2, window_bounds = array<i64: 1, 256>}, {pipeline_mode = #tpu.pipeline_mode<synchronous>, transform_indices = @transform_3, window_bounds = array<i64: 256, 128>}, {pipeline_mode = #tpu.pipeline_mode<synchronous>, transform_indices = @transform_4, window_bounds = array<i64: 1, 128>}, {transform_indices = @transform_5, window_bounds = array<i64: 128, 128>}]} {
    %c0_i32 = arith.constant 0 : i32
    %0 = arith.cmpi eq, %arg1, %c0_i32 : i32
    %1 = arith.extui %0 : i1 to i32
    %c0_i32_0 = arith.constant 0 : i32
    %2 = arith.cmpi ne, %1, %c0_i32_0 : i32
    scf.if %2 {
      %cst_16 = arith.constant 0.000000e+00 : f32
      %19 = vector.broadcast %cst_16 : f32 to vector<128x128xf32>
      %c0_17 = arith.constant 0 : index
      %c0_18 = arith.constant 0 : index
      %20 = vector.load %arg8[%c0_17, %c0_18] : memref<128x128xf32, #tpu.memory_space<vmem>>, vector<128x128xf32>
      tpu.vector_store %arg8[%c0_17, %c0_18], %19 {strides = array<i32>} : memref<128x128xf32, #tpu.memory_space<vmem>>, vector<128x128xf32>,
    } else {
    }
    %c0 = arith.constant 0 : index
    %c0_1 = arith.constant 0 : index
    %3 = vector.load %arg2[%c0, %c0_1] : memref<128x128xf32, #tpu.memory_space<vmem>>, vector<128x128xf32>
    %c0_2 = arith.constant 0 : index
    %c0_3 = arith.constant 0 : index
    %4 = vector.load %arg3[%c0_2, %c0_3] : memref<128x256xf32, #tpu.memory_space<vmem>>, vector<128x256xf32>
    %cst = arith.constant dense<0.000000e+00> : vector<128x256xf32>
    %5 = tpu.matmul %3, %4, %cst {dimension_numbers = #tpu.dot_dimension_numbers<[1], [0], [0], [1], [0, 0, 1, 1], [], []>} : vector<128x128xf32>, vector<128x256xf32>, vector<128x256xf32> -> vector<128x256xf32>
    %c0_4 = arith.constant 0 : index
    %c0_5 = arith.constant 0 : index
    %6 = vector.load %arg4[%c0_4, %c0_5] : memref<1x256xf32, #tpu.memory_space<vmem>>, vector<1x256xf32>
    %7 = vector.broadcast %6 : vector<1x256xf32> to vector<128x256xf32>
    %8 = arith.addf %5, %7 : vector<128x256xf32>
    %cst_6 = arith.constant 0.000000e+00 : f32
    %9 = vector.broadcast %cst_6 : f32 to vector<128x256xf32>
    %10 = arith.maximumf %8, %9 : vector<128x256xf32>
    %c0_7 = arith.constant 0 : index
    %c0_8 = arith.constant 0 : index
    %11 = vector.load %arg8[%c0_7, %c0_8] : memref<128x128xf32, #tpu.memory_space<vmem>>, vector<128x128xf32>
    %c0_9 = arith.constant 0 : index
    %c0_10 = arith.constant 0 : index
    %12 = vector.load %arg5[%c0_9, %c0_10] : memref<256x128xf32, #tpu.memory_space<vmem>>, vector<256x128xf32>
    %cst_11 = arith.constant dense<0.000000e+00> : vector<128x128xf32>
    %13 = tpu.matmul %10, %12, %cst_11 {dimension_numbers = #tpu.dot_dimension_numbers<[1], [0], [0], [1], [0, 0, 1, 1], [], []>} : vector<128x256xf32>, vector<256x128xf32>, vector<128x128xf32> -> vector<128x128xf32>
    %14 = arith.addf %11, %13 : vector<128x128xf32>
    %c0_12 = arith.constant 0 : index
    %c0_13 = arith.constant 0 : index
    %15 = vector.load %arg8[%c0_12, %c0_13] : memref<128x128xf32, #tpu.memory_space<vmem>>, vector<128x128xf32>
    tpu.vector_store %arg8[%c0_12, %c0_13], %14 {strides = array<i32>} : memref<128x128xf32, #tpu.memory_space<vmem>>, vector<128x128xf32>,
    %c0_i32_14 = arith.constant 0 : i32
    %16 = arith.cmpi eq, %arg1, %c0_i32_14 : i32
    %17 = arith.extui %16 : i1 to i32
    %c0_i32_15 = arith.constant 0 : i32
    %18 = arith.cmpi ne, %17, %c0_i32_15 : i32
    scf.if %18 {
      %c0_16 = arith.constant 0 : index
      %c0_17 = arith.constant 0 : index
      %19 = vector.load %arg8[%c0_16, %c0_17] : memref<128x128xf32, #tpu.memory_space<vmem>>, vector<128x128xf32>
      %c0_18 = arith.constant 0 : index
      %c0_19 = arith.constant 0 : index
      %20 = vector.load %arg6[%c0_18, %c0_19] : memref<1x128xf32, #tpu.memory_space<vmem>>, vector<1x128xf32>
      %21 = vector.broadcast %20 : vector<1x128xf32> to vector<128x128xf32>
      %22 = arith.addf %19, %21 : vector<128x128xf32>
      %c0_20 = arith.constant 0 : index
      %c0_21 = arith.constant 0 : index
      %23 = vector.load %arg7[%c0_20, %c0_21] : memref<128x128xf32, #tpu.memory_space<vmem>>, vector<128x128xf32>
      tpu.vector_store %arg7[%c0_20, %c0_21], %22 {strides = array<i32>} : memref<128x128xf32, #tpu.memory_space<vmem>>, vector<128x128xf32>,
    } else {
    }
    return
  }
  func.func @transform_0(%arg0: i32, %arg1: i32) -> (i32, i32) {
    %c0_i32 = arith.constant 0 : i32
    %c0_i32_0 = arith.constant 0 : i32
    return %arg0, %c0_i32 : i32, i32
  }
  func.func @transform_1(%arg0: i32, %arg1: i32) -> (i32, i32) {
    %c0_i32 = arith.constant 0 : i32
    %c0_i32_0 = arith.constant 0 : i32
    return %c0_i32, %arg1 : i32, i32
  }
  func.func @transform_2(%arg0: i32, %arg1: i32) -> (i32, i32) {
    %c0_i32 = arith.constant 0 : i32
    %c0_i32_0 = arith.constant 0 : i32
    return %c0_i32, %arg1 : i32, i32
  }
  func.func @transform_3(%arg0: i32, %arg1: i32) -> (i32, i32) {
    %c0_i32 = arith.constant 0 : i32
    %c0_i32_0 = arith.constant 0 : i32
    return %arg1, %c0_i32 : i32, i32
  }
  func.func @transform_4(%arg0: i32, %arg1: i32) -> (i32, i32) {
    %c0_i32 = arith.constant 0 : i32
    %c0_i32_0 = arith.constant 0 : i32
    %c0_i32_1 = arith.constant 0 : i32
    return %c0_i32, %c0_i32_0 : i32, i32
  }
  func.func @transform_5(%arg0: i32, %arg1: i32) -> (i32, i32) {
    %c0_i32 = arith.constant 0 : i32
    %c0_i32_0 = arith.constant 0 : i32
    return %arg0, %c0_i32 : i32, i32
  }
}

module attributes {stable_mosaic.version = 11 : i64} {
  func.func @_ffn_kernel(%arg0: i32, %arg1: i32, %arg2: memref<128x128xf32, #tpu.memory_space<vmem>>, %arg3: memref<128x256xf32, #tpu.memory_space<vmem>>, %arg4: memref<1x256xf32, #tpu.memory_space<vmem>>, %arg5: memref<256x128xf32, #tpu.memory_space<vmem>>, %arg6: memref<1x128xf32, #tpu.memory_space<vmem>>, %arg7: memref<128x128xf32, #tpu.memory_space<vmem>>, %arg8: memref<128x128xf32, #tpu.memory_space<vmem>>) attributes {dimension_semantics = [#tpu.dimension_semantics<parallel>, #tpu.dimension_semantics<arbitrary>], iteration_bounds = array<i64: 2, 1>, scalar_prefetch = 0 : i64, scratch_operands = 1 : i64, tpu.core_type = #tpu.core_type<tc>, window_params = [{transform_indices = @transform_0, window_bounds = array<i64: 128, 128>}, {transform_indices = @transform_1, window_bounds = array<i64: 128, 256>}, {transform_indices = @transform_2, window_bounds = array<i64: 1, 256>}, {transform_indices = @transform_3, window_bounds = array<i64: 256, 128>}, {pipeline_mode = #tpu.pipeline_mode<synchronous>, transform_indices = @transform_4, window_bounds = array<i64: 1, 128>}, {transform_indices = @transform_5, window_bounds = array<i64: 128, 128>}]} {
    %c0_i32 = arith.constant 0 : i32
    %0 = arith.cmpi eq, %arg1, %c0_i32 : i32
    %1 = arith.extui %0 : i1 to i32
    %c0_i32_0 = arith.constant 0 : i32
    %2 = arith.cmpi ne, %1, %c0_i32_0 : i32
    scf.if %2 {
      %cst_16 = arith.constant 0.000000e+00 : f32
      %19 = vector.broadcast %cst_16 : f32 to vector<128x128xf32>
      %c0_17 = arith.constant 0 : index
      %c0_18 = arith.constant 0 : index
      %20 = vector.load %arg8[%c0_17, %c0_18] : memref<128x128xf32, #tpu.memory_space<vmem>>, vector<128x128xf32>
      tpu.vector_store %arg8[%c0_17, %c0_18], %19 {strides = array<i32>} : memref<128x128xf32, #tpu.memory_space<vmem>>, vector<128x128xf32>,
    } else {
    }
    %c0 = arith.constant 0 : index
    %c0_1 = arith.constant 0 : index
    %3 = vector.load %arg2[%c0, %c0_1] : memref<128x128xf32, #tpu.memory_space<vmem>>, vector<128x128xf32>
    %c0_2 = arith.constant 0 : index
    %c0_3 = arith.constant 0 : index
    %4 = vector.load %arg3[%c0_2, %c0_3] : memref<128x256xf32, #tpu.memory_space<vmem>>, vector<128x256xf32>
    %cst = arith.constant dense<0.000000e+00> : vector<128x256xf32>
    %5 = tpu.matmul %3, %4, %cst {dimension_numbers = #tpu.dot_dimension_numbers<[1], [0], [0], [1], [0, 0, 1, 1], [], []>} : vector<128x128xf32>, vector<128x256xf32>, vector<128x256xf32> -> vector<128x256xf32>
    %c0_4 = arith.constant 0 : index
    %c0_5 = arith.constant 0 : index
    %6 = vector.load %arg4[%c0_4, %c0_5] : memref<1x256xf32, #tpu.memory_space<vmem>>, vector<1x256xf32>
    %7 = vector.broadcast %6 : vector<1x256xf32> to vector<128x256xf32>
    %8 = arith.addf %5, %7 : vector<128x256xf32>
    %cst_6 = arith.constant 0.000000e+00 : f32
    %9 = vector.broadcast %cst_6 : f32 to vector<128x256xf32>
    %10 = arith.maximumf %8, %9 : vector<128x256xf32>
    %c0_7 = arith.constant 0 : index
    %c0_8 = arith.constant 0 : index
    %11 = vector.load %arg8[%c0_7, %c0_8] : memref<128x128xf32, #tpu.memory_space<vmem>>, vector<128x128xf32>
    %c0_9 = arith.constant 0 : index
    %c0_10 = arith.constant 0 : index
    %12 = vector.load %arg5[%c0_9, %c0_10] : memref<256x128xf32, #tpu.memory_space<vmem>>, vector<256x128xf32>
    %cst_11 = arith.constant dense<0.000000e+00> : vector<128x128xf32>
    %13 = tpu.matmul %10, %12, %cst_11 {dimension_numbers = #tpu.dot_dimension_numbers<[1], [0], [0], [1], [0, 0, 1, 1], [], []>} : vector<128x256xf32>, vector<256x128xf32>, vector<128x128xf32> -> vector<128x128xf32>
    %14 = arith.addf %11, %13 : vector<128x128xf32>
    %c0_12 = arith.constant 0 : index
    %c0_13 = arith.constant 0 : index
    %15 = vector.load %arg8[%c0_12, %c0_13] : memref<128x128xf32, #tpu.memory_space<vmem>>, vector<128x128xf32>
    tpu.vector_store %arg8[%c0_12, %c0_13], %14 {strides = array<i32>} : memref<128x128xf32, #tpu.memory_space<vmem>>, vector<128x128xf32>,
    %c0_i32_14 = arith.constant 0 : i32
    %16 = arith.cmpi eq, %arg1, %c0_i32_14 : i32
    %17 = arith.extui %16 : i1 to i32
    %c0_i32_15 = arith.constant 0 : i32
    %18 = arith.cmpi ne, %17, %c0_i32_15 : i32
    scf.if %18 {
      %c0_16 = arith.constant 0 : index
      %c0_17 = arith.constant 0 : index
      %19 = vector.load %arg8[%c0_16, %c0_17] : memref<128x128xf32, #tpu.memory_space<vmem>>, vector<128x128xf32>
      %c0_18 = arith.constant 0 : index
      %c0_19 = arith.constant 0 : index
      %20 = vector.load %arg6[%c0_18, %c0_19] : memref<1x128xf32, #tpu.memory_space<vmem>>, vector<1x128xf32>
      %21 = vector.broadcast %20 : vector<1x128xf32> to vector<128x128xf32>
      %22 = arith.addf %19, %21 : vector<128x128xf32>
      %c0_20 = arith.constant 0 : index
      %c0_21 = arith.constant 0 : index
      %23 = vector.load %arg7[%c0_20, %c0_21] : memref<128x128xf32, #tpu.memory_space<vmem>>, vector<128x128xf32>
      tpu.vector_store %arg7[%c0_20, %c0_21], %22 {strides = array<i32>} : memref<128x128xf32, #tpu.memory_space<vmem>>, vector<128x128xf32>,
    } else {
    }
    return
  }
  func.func @transform_0(%arg0: i32, %arg1: i32) -> (i32, i32) {
    %c0_i32 = arith.constant 0 : i32
    %c0_i32_0 = arith.constant 0 : i32
    return %arg0, %c0_i32 : i32, i32
  }
  func.func @transform_1(%arg0: i32, %arg1: i32) -> (i32, i32) {
    %c0_i32 = arith.constant 0 : i32
    %c0_i32_0 = arith.constant 0 : i32
    return %c0_i32, %arg1 : i32, i32
  }
  func.func @transform_2(%arg0: i32, %arg1: i32) -> (i32, i32) {
    %c0_i32 = arith.constant 0 : i32
    %c0_i32_0 = arith.constant 0 : i32
    return %c0_i32, %arg1 : i32, i32
  }
  func.func @transform_3(%arg0: i32, %arg1: i32) -> (i32, i32) {
    %c0_i32 = arith.constant 0 : i32
    %c0_i32_0 = arith.constant 0 : i32
    return %arg1, %c0_i32 : i32, i32
  }
  func.func @transform_4(%arg0: i32, %arg1: i32) -> (i32, i32) {
    %c0_i32 = arith.constant 0 : i32
    %c0_i32_0 = arith.constant 0 : i32
    %c0_i32_1 = arith.constant 0 : i32
    return %c0_i32, %c0_i32_0 : i32, i32
  }
  func.func @transform_5(%arg0: i32, %arg1: i32) -> (i32, i32) {
    %c0_i32 = arith.constant 0 : i32
    %c0_i32_0 = arith.constant 0 : i32
    return %arg0, %c0_i32 : i32, i32
  }
}

</mosaic_0001>

<bundles_post_ra>
// kernel: _ffn_call.1
= control target key start
LH: loop header
LB: loop body
LE: loop exit
PB: predicated region body
PF: predicated region fallthrough
CT: control target
= control target key end

     0   :  { %s1615_s0 = inlined_call_operand.hbm [shape: f32[250,128], index: 0, kind: input, shape index: {}]   ;;  %s1616_s1 = inlined_call_operand.hbm [shape: f32[128,256], index: 1, kind: input, shape index: {}]   ;;  %s1617_s2 = inlined_call_operand.hbm [shape: f32[1,256], index: 2, kind: input, shape index: {}]   ;;  %s1618_s3 = inlined_call_operand.hbm [shape: f32[256,128], index: 3, kind: input, shape index: {}]   ;;  %s1619_s4 = inlined_call_operand.vmem [shape: f32[1,128], index: 4, kind: input, shape index: {}]   ;;  %s1620_s5 = inlined_call_operand.hbm [shape: f32[250,128], index: 5, kind: output, shape index: {}]  }
   0x1   :  { %1623 = sst [smem:[#allocation16_spill]] %s1616_s1 }
   0x2   :  { %1624 = sst [smem:[#allocation17_spill]] %s1617_s2 }
   0x3   :  { %1625 = sst [smem:[#allocation18_spill]] %s1618_s3 }
   0x4   :  { %10 = vsyncpa [#allocation4], 0 }
   0x5   :  { %12 = vsyncpa [#allocation4 + $0x1], 0 }
   0x6   :  { %13 = vsyncpa [#allocation7], 0 }
   0x7   :  { %14 = vsyncpa [#allocation10], 0 }
   0x8   :  { %15 = vsyncpa [#allocation5], 0 }
   0x9   :  { %17 = vsyncpa [#allocation5 + $0x1], 0  ;;  %s1340_s18 = smov 0   ;;  %s1342_s19 = smov 0  }
   0xa   :  { %s1344_s20 = smov 0   ;;  %s1346_s21 = smov 0  }
   0xb   :  { %s1348_s22 = smov 0   ;;  %s1350_s23 = smov 0  }
   0xc LB: > { %s966_s24 = sadd.s32 4294967295, %s1299_s23   ;;  %s967_s25 = sadd.s32 4294967294, %s1299_s23   ;;  %s1299_s23 = sphi %s1350_s23, %s23_s23   ;;  %s1295_s22 = sphi %s1348_s22, %s1643_s22   ;;  %s1291_s21 = sphi %s1346_s21, %s1642_s21   ;;  %s1287_s20 = sphi %s1344_s20, %s1641_s20   ;;  %s1283_s19 = sphi %s1342_s19, %s1640_s19   ;;  %s1279_s18 = sphi %s1340_s18, %s1639_s18  }
   0xd   : > { %p55_p0 = scmp.ne.s32.totalorder %s1283_s19, %s1279_s18  ;;  %p1374_p1 = scmp.eq.s32.totalorder %s966_s24, 0 }
   0xe   : > { %p1378_p2 = scmp.eq.s32.totalorder %s966_s24, 1  ;;  %p184_p3 = scmp.eq.s32.totalorder %s967_s25, 1 }
   0xf   : > { %p1384_p4 = por %p1374_p1, %p55_p0  ;;  %p968_p5 = scmp.ge.s32.totalorder %s1299_s23, 1 }
  0x10   : > { %p1389_p6 = por %p184_p3, %p55_p0  ;;  %p191_p7 = scmp.lt.s32.totalorder %s1299_s23, 3 }
  0x11   : > { %s1630_s1 = sld [smem:[#allocation16_spill]]  ;;  %s1301_s9 = smov [#allocation6]  }
  0x12   : > { %p1397_p8 = pnand %p968_p5, %p191_p7  ;;  %s207_s10 = sshll.u32 %s1301_s9, 4  ;;  %s208_s10 = int_to_ptr.vmem [resolvable:$true] %s207_s10 }
  0x13   : > { %p972_p11 = scmp.ge.s32.totalorder %s1299_s23, 2  ;;  %s1633_s2 = sld [smem:[#allocation17_spill]] }
  0x14   : > { %p1005_p9 = pneg %p1397_p8  ;;  %s1302_s15 = smov 256  }
  0x15   : > { %s1303_s16 = smov 16   ;;  %s1304_s17 = smov [#allocation8]  }
  0x16   : > { %p1405_p10 = pnand %p1005_p9, %p1374_p1  ;;  %s224_s24 = sshll.u32 %s1304_s17, 4  ;;  %s225_s24 = int_to_ptr.vmem [resolvable:$true] %s224_s24 }
  0x17   : > { %s205_s7 = sshll.u32 %s1630_s1, 4  ;;  %s1634_s3 = sld [smem:[#allocation18_spill]]  ;;  %s206_s7 = int_to_ptr.hbm [resolvable:$true] %s205_s7 }
  0x18   : > { %1008 = dma.hbm_to_vmem [thread:$0]  (!%p1405_p10), %s206_s7, 4096, %s208_s10, [#allocation7], %s1302_s15, %s1302_s15, %s1303_s16  }
  0x19   : > { %s222_s14 = sshll.u32 %s1633_s2, 4  ;;  %s1305_s9 = smov [#allocation9]   ;;  %s223_s14 = int_to_ptr.hbm [resolvable:$true] %s222_s14 }
  0x1a   : > { %1011 = dma.hbm_to_vmem [thread:$0]  (!%p1405_p10), %s223_s14, 32, %s225_s24, [#allocation7]  }
  0x1b   : > { %s238_s12 = sshll.u32 %s1305_s9, 4  ;;  %s1621_s13 = smov 128   ;;  %s239_s12 = int_to_ptr.vmem [resolvable:$true] %s238_s12 }
  0x1c   : > { %s1622_s7 = smov 8   ;;  %s42_s10 = sadd.s32 1, %s1287_s20 }
  0x1d   : > { %s236_s6 = sshll.u32 %s1634_s3, 4  ;;  %s35_s15 = sadd.s32 1, %s1295_s22  ;;  %s237_s6 = int_to_ptr.hbm [resolvable:$true] %s236_s6 }
  0x1e   : > { %1014 = dma.hbm_to_vmem [thread:$0]  (!%p1405_p10), %s237_s6, 4096, %s239_s12, [#allocation10], %s1621_s13, %s1621_s13, %s1622_s7  }
  0x1f   : > { %p49_p12 = scmp.ne.s32.totalorder %s1287_s20, %s1283_s19  ;;  %p37_p13 = scmp.ge.s32.totalorder %s35_s15, 2 }
  0x20   : > { %p50_p0 = scmp.eq.s32.totalorder %s1299_s23, 0  ;;  %p1026_p5 = scmp.lt.s32.totalorder %s1299_s23, 2 }
  0x21   : > { %p1432_p3 = por %p1378_p2, %p49_p12  ;;  %s1645_s15 = smov (%p37_p13, %s35_s15), 0 }
  0x22   : > { %p1439_p7 = por %p50_p0, %p49_p12  ;;  %s255_s16 = sand.u32 1, %s1287_s20  }
  0x23   : > { %s39_s17 = ssub.s32 %s1295_s22, %s1645_s15  ;;  %s973_s24 = sshll.u32 %s255_s16, 7 }
  0x24   : > { %p40_p9 = scmp.eq.s32.totalorder %s39_s17, 0  ;;  %s987_s25 = sshll.u32 %s1295_s22, 7 }
  0x25   : > { %s264_s9 = scalar_lea.hbm %s1615_s0, %s987_s25  ;;  %s259_s12 = scalar_lea.vmem [#allocation3], %s973_s24 }
  0x26   : > { %s1448_s27 = scalar_select %p40_p9, %s1287_s20, %s42_s10  }
  0x27   : > { %s267_s13 = sshll.u32 %s259_s12, 4  ;;  %s265_s7 = sshll.u32 %s264_s9, 4  ;;  %s268_s13 = int_to_ptr.vmem [resolvable:$true] %s267_s13  ;;  %s266_s7 = int_to_ptr.hbm [resolvable:$true] %s265_s7 }
  0x28   : > { %p1016_p2 = pnand %p1026_p5, %p1439_p7  ;;  %s256_s1 = scalar_lea.sflag [#allocation4], %s255_s16 }
  0x29   : > { %s1637_s2 = smov 8   ;;  %s1638_s3 = smov 128  }
  0x2a   : > { %1018 = dma.hbm_to_vmem [thread:$0]  (!%p1016_p2), %s266_s7, 2048, %s268_s13, %s256_s1, %s1638_s3, %s1638_s3, %s1637_s2  }
  0x2b   : > { %279 = sbr.rel (%p1397_p8) target bundleno = 475 (0x1db), region = 40  ;;  %s1463_s10 = sand.u32 (!%p1397_p8), 1, %s1283_s19  }
  0x2c   : > { %s977_s17 = sshll.u32 (!%p1397_p8), %s1463_s10, 7  ;;  %s282_s24 = scalar_lea.sflag (!%p1397_p8), [#allocation4], %s1463_s10 }
  0x2d   : > { %s1469_s11 = scalar_lea.vmem (!%p1397_p8), [#allocation3], %s977_s17 }
  0x30   : > { %1262 = dma.done.wait (%p1384_p4), %s282_s24, 2048  }
  0x31   : > { %1264 = vsyncadd (%p1384_p4), %s282_s24, 4294965248 }
  0x32   : > { %1266 = dma.done.wait (%p1374_p1), [#allocation7], 4128  }
  0x33   : > { %1268 = vsyncadd (%p1374_p1), [#allocation7], 4294963168 }
  0x34   : > { %1270 = dma.done.wait (%p1374_p1), [#allocation10], 4096  }
  0x35   : > { %1272 = vsyncadd (%p1374_p1), [#allocation10], 4294963200  ;;  %v399_v0 = vld [vmem:[#allocation6 + $0xf0] sm:$0xff]  ;;  %v400_v1 = vld [vmem:[#allocation6 + $0xf8] sm:$0xff]  ;;  %s1543_s3 = scalar_lea.vmem [#allocation11], %s977_s17  ;;  %s988_s26 = sshll.u32 %s1291_s21, 7 }
  0x36   : > { %v397_v2 = vld [vmem:[#allocation6 + $0xe0] sm:$0xff]  ;;  %407 = vmatpush.msra.mxu0 %v399_v0  ;;  %472 = vmatpush.msra.mxu1 %v400_v1  ;;  %v398_v3 = vld [vmem:[#allocation6 + $0xe8] sm:$0xff]  ;;  %v395_v4 = vld [vmem:[#allocation6 + $0xd0] sm:$0xff]  ;;  %s846_s13 = scalar_lea.hbm %s1620_s5, %s988_s26  ;;  %s847_s7 = sshll.u32 %s1543_s3, 4  ;;  %s848_s7 = int_to_ptr.vmem [resolvable:$true] %s847_s7 }
  0x37   : > { %v396_v5 = vld [vmem:[#allocation6 + $0xd8] sm:$0xff]  ;;  %v393_v6 = vld [vmem:[#allocation6 + $0xc0] sm:$0xff]  ;;  %v394_v7 = vld [vmem:[#allocation6 + $0xc8] sm:$0xff]  ;;  %s849_s16 = sshll.u32 %s846_s13, 4  ;;  %s835_s25 = scalar_lea.sflag [#allocation5], %s1463_s10  ;;  %s850_s16 = int_to_ptr.hbm [resolvable:$true] %s849_s16 }
  0x38   : > { %408 = vmatpush.msra.mxu0 %v397_v2  ;;  %473 = vmatpush.msra.mxu1 %v398_v3  ;;  %v391_v8 = vld [vmem:[#allocation6 + $0xb0] sm:$0xff]  ;;  %v392_v9 = vld [vmem:[#allocation6 + $0xb8] sm:$0xff]  ;;  %v389_v10 = vld [vmem:[#allocation6 + $0xa0] sm:$0xff]  ;;  %s1223_s21 = sshra.s32 %s850_s16, 4  ;;  %s1229_s12 = scalar_lea.hbm %s1620_s5, 256  ;;  %s1224_s21 = int_to_ptr.hbm [resolvable:$true] %s1223_s21 }
  0x39   : > { %v390_v11 = vld [vmem:[#allocation6 + $0xa8] sm:$0xff]  ;;  %v387_v12 = vld [vmem:[#allocation6 + $0x90] sm:$0xff]  ;;  %v388_v13 = vld [vmem:[#allocation6 + $0x98] sm:$0xff]  ;;  %s1225_s30 = scalar_lea.hbm %s1224_s21, 128  ;;  %p1230_p10 = scmp.lt.s32.totalorder %s1224_s21, %s1620_s5 }
  0x3a   : > { %409 = vmatpush.msra.mxu0 %v395_v4  ;;  %474 = vmatpush.msra.mxu1 %v396_v5  ;;  %v385_v14 = vld [vmem:[#allocation6 + $0x80] sm:$0xff]  ;;  %v386_v15 = vld [vmem:[#allocation6 + $0x88] sm:$0xff]  ;;  %v383_v16 = vld [vmem:[#allocation6 + $0x70] sm:$0xff]  ;;  %p1226_p1 = scmp.ne.s32.totalorder %s1224_s21, %s1225_s30  ;;  %p1231_p12 = scmp.lt.s32.totalorder %s1229_s12, %s1225_s30 }
  0x3b   : > { %v384_v17 = vld [vmem:[#allocation6 + $0x78] sm:$0xff]  ;;  %v381_v18 = vld [vmem:[#allocation6 + $0x60] sm:$0xff]  ;;  %v382_v19 = vld [vmem:[#allocation6 + $0x68] sm:$0xff] }
  0x3c   : > { %410 = vmatpush.msra.mxu0 %v393_v6  ;;  %475 = vmatpush.msra.mxu1 %v394_v7  ;;  %v379_v20 = vld [vmem:[#allocation6 + $0x50] sm:$0xff]  ;;  %v380_v21 = vld [vmem:[#allocation6 + $0x58] sm:$0xff]  ;;  %v377_v22 = vld [vmem:[#allocation6 + $0x40] sm:$0xff]  ;;  %p1227_p4 = pnand %p1226_p1, %p1432_p3  ;;  %p1232_p13 = por %p1231_p12, %p1230_p10 }
  0x3d   : > { %v378_v23 = vld [vmem:[#allocation6 + $0x48] sm:$0xff]  ;;  %v375_v24 = vld [vmem:[#allocation6 + $0x30] sm:$0xff]  ;;  %v376_v25 = vld [vmem:[#allocation6 + $0x38] sm:$0xff] }
  0x3e   : > { %411 = vmatpush.msra.mxu0 %v391_v8  ;;  %476 = vmatpush.msra.mxu1 %v392_v9  ;;  %v373_v26 = vld [vmem:[#allocation6 + $0x20] sm:$0xff]  ;;  %v374_v27 = vld [vmem:[#allocation6 + $0x28] sm:$0xff]  ;;  %v371_v28 = vld [vmem:[#allocation6 + $0x10] sm:$0xff]  ;;  %p1228_p8 = pneg %p1227_p4 }
  0x3f   : > { %v372_v29 = vld [vmem:[#allocation6 + $0x18] sm:$0xff]  ;;  %v369_v30 = vld [vmem:[#allocation6] sm:$0xff]  ;;  %v370_v31 = vld [vmem:[#allocation6 + $0x8] sm:$0xff] }
  0x40   : > { %412 = vmatpush.msra.mxu0 %v389_v10  ;;  %477 = vmatpush.msra.mxu1 %v390_v11  ;;  %v353_v32 = vld [vmem:[%s1469_s11] sm:$0xff]  ;;  %v354_v33 = vld [vmem:[%s1469_s11 + $0x8] sm:$0xff]  ;;  %v355_v34 = vld [vmem:[%s1469_s11 + $0x10] sm:$0xff]  ;;  %p1233_p0 = pnand %p1232_p13, %p1228_p8 }
  0x41   : > { %v356_v35 = vld [vmem:[%s1469_s11 + $0x18] sm:$0xff]  ;;  %v357_v36 = vld [vmem:[%s1469_s11 + $0x20] sm:$0xff]  ;;  %v358_v37 = vld [vmem:[%s1469_s11 + $0x28] sm:$0xff] }
  0x42   : > { %413 = vmatpush.msra.mxu0 %v387_v12  ;;  %478 = vmatpush.msra.mxu1 %v388_v13  ;;  %v359_v38 = vld [vmem:[%s1469_s11 + $0x30] sm:$0xff]  ;;  %v360_v39 = vld [vmem:[%s1469_s11 + $0x38] sm:$0xff]  ;;  %v361_v40 = vld [vmem:[%s1469_s11 + $0x40] sm:$0xff] }
  0x43   : > { %v600_v41 = vld [vmem:[#allocation9 + $0x78] sm:$0xff]  ;;  %v599_v43 = vld [vmem:[#allocation9 + $0x70] sm:$0xff]  ;;  %v598_v45 = vld [vmem:[#allocation9 + $0x68] sm:$0xff] }
  0x44   : > { %414 = vmatpush.msra.mxu0 %v385_v14  ;;  %479 = vmatpush.msra.mxu1 %v386_v15  ;;  %v616_v42 = vld [vmem:[#allocation9 + $0xf8] sm:$0xff]  ;;  %v615_v44 = vld [vmem:[#allocation9 + $0xf0] sm:$0xff]  ;;  %v614_v46 = vld [vmem:[#allocation9 + $0xe8] sm:$0xff] }
  0x45   : > { %617 = vmatpush.msra.mxu2 %v600_v41  ;;  %682 = vmatpush.msra.mxu3 %v616_v42  ;;  %v362_v47 = vld [vmem:[%s1469_s11 + $0x48] sm:$0xff]  ;;  %v596_v50 = vld [vmem:[#allocation9 + $0x58] sm:$0xff]  ;;  %v595_v52 = vld [vmem:[#allocation9 + $0x50] sm:$0xff] }
  0x46   : > { %415 = vmatpush.msra.mxu0 %v383_v16  ;;  %480 = vmatpush.msra.mxu1 %v384_v17  ;;  %v597_v48 = vld [vmem:[#allocation9 + $0x60] sm:$0xff]  ;;  %v612_v51 = vld [vmem:[#allocation9 + $0xd8] sm:$0xff]  ;;  %v611_v53 = vld [vmem:[#allocation9 + $0xd0] sm:$0xff] }
  0x47   : > { %618 = vmatpush.msra.mxu2 %v599_v43  ;;  %683 = vmatpush.msra.mxu3 %v615_v44  ;;  %v613_v49 = vld [vmem:[#allocation9 + $0xe0] sm:$0xff]  ;;  %v594_v54 = vld [vmem:[#allocation9 + $0x48] sm:$0xff]  ;;  %v592_v59 = vld [vmem:[#allocation9 + $0x38] sm:$0xff] }
  0x48   : > { %416 = vmatpush.msra.mxu0 %v381_v18  ;;  %481 = vmatpush.msra.mxu1 %v382_v19  ;;  %v610_v55 = vld [vmem:[#allocation9 + $0xc8] sm:$0xff]  ;;  %v593_v57 = vld [vmem:[#allocation9 + $0x40] sm:$0xff]  ;;  %v608_v60 = vld [vmem:[#allocation9 + $0xb8] sm:$0xff] }
  0x49   : > { %619 = vmatpush.msra.mxu2 %v598_v45  ;;  %684 = vmatpush.msra.mxu3 %v614_v46  ;;  %v363_v56 = vld [vmem:[%s1469_s11 + $0x50] sm:$0xff]  ;;  %v609_v58 = vld [vmem:[#allocation9 + $0xc0] sm:$0xff]  ;;  %v364_v1 = vld [vmem:[%s1469_s11 + $0x58] sm:$0xff] }
  0x4a   : > { %417 = vmatpush.msra.mxu0 %v379_v20  ;;  %482 = vmatpush.msra.mxu1 %v380_v21  ;;  %v591_v61 = vld [vmem:[#allocation9 + $0x30] sm:$0xff]  ;;  %v590_v63 = vld [vmem:[#allocation9 + $0x28] sm:$0xff]  ;;  %v589_v2 = vld [vmem:[#allocation9 + $0x20] sm:$0xff] }
  0x4b   : > { %620 = vmatpush.msra.mxu2 %v597_v48  ;;  %685 = vmatpush.msra.mxu3 %v613_v49  ;;  %v607_v62 = vld [vmem:[#allocation9 + $0xb0] sm:$0xff]  ;;  %v606_v0 = vld [vmem:[#allocation9 + $0xa8] sm:$0xff]  ;;  %v605_v3 = vld [vmem:[#allocation9 + $0xa0] sm:$0xff] }
  0x4c   : > { %418 = vmatpush.msra.mxu0 %v377_v22  ;;  %483 = vmatpush.msra.mxu1 %v378_v23  ;;  %v588_v4 = vld [vmem:[#allocation9 + $0x18] sm:$0xff]  ;;  %v587_v6 = vld [vmem:[#allocation9 + $0x10] sm:$0xff]  ;;  %v586_v9 = vld [vmem:[#allocation9 + $0x8] sm:$0xff] }
  0x4d   : > { %621 = vmatpush.msra.mxu2 %v596_v50  ;;  %686 = vmatpush.msra.mxu3 %v612_v51  ;;  %v604_v5 = vld [vmem:[#allocation9 + $0x98] sm:$0xff]  ;;  %v603_v7 = vld [vmem:[#allocation9 + $0x90] sm:$0xff]  ;;  %v602_v10 = vld [vmem:[#allocation9 + $0x88] sm:$0xff] }
  0x4e   : > { %419 = vmatpush.msra.mxu0 %v375_v24  ;;  %484 = vmatpush.msra.mxu1 %v376_v25  ;;  %v365_v8 = vld [vmem:[%s1469_s11 + $0x60] sm:$0xff]  ;;  %v366_v13 = vld [vmem:[%s1469_s11 + $0x68] sm:$0xff]  ;;  %v367_v14 = vld [vmem:[%s1469_s11 + $0x70] sm:$0xff] }
  0x4f   : > { %622 = vmatpush.msra.mxu2 %v595_v52  ;;  %687 = vmatpush.msra.mxu3 %v611_v53  ;;  %v585_v11 = vld [vmem:[#allocation9] sm:$0xff]  ;;  %v368_v15 = vld [vmem:[%s1469_s11 + $0x78] sm:$0xff]  ;;  %v401_v16 = vld [vmem:[#allocation8] sm:$0x3] }
  0x50   : > { %420 = vmatpush.msra.mxu0 %v373_v26  ;;  %485 = vmatpush.msra.mxu1 %v374_v27  ;;  %v601_v12 = vld [vmem:[#allocation9 + $0x80] sm:$0xff]  ;;  %v1499_v17 = vperm.slane %v401_v16, 0  ;;  %v1501_v18 = vperm.slane %v401_v16, 1 }
  0x51   : > { %623 = vmatpush.msra.mxu2 %v594_v54  ;;  %688 = vmatpush.msra.mxu3 %v610_v55 }
  0x52   : > { %421 = vmatpush.msra.mxu0 %v371_v28  ;;  %486 = vmatpush.msra.mxu1 %v372_v29 }
  0x53   : > { %624 = vmatpush.msra.mxu2 %v593_v57  ;;  %689 = vmatpush.msra.mxu3 %v609_v58 }
  0x54   : > { %422 = vmatpush.msra.mxu0 %v369_v30  ;;  %487 = vmatpush.msra.mxu1 %v370_v31 }
  0x55   : > { %423 = vmatmul.f32.vlgmr.msra.gmra.mxu0 %v353_v32  ;;  %488 = vmatmul.f32.vlgmr.msra.gmra.mxu1 %v353_v32 }
  0x56   : > { %625 = vmatpush.msra.mxu2 %v592_v59  ;;  %690 = vmatpush.msra.mxu3 %v608_v60 }
  0x58   : > { %626 = vmatpush.msra.mxu2 %v591_v61  ;;  %691 = vmatpush.msra.mxu3 %v607_v62 }
  0x5a   : > { %627 = vmatpush.msra.mxu2 %v590_v63  ;;  %692 = vmatpush.msra.mxu3 %v606_v0 }
  0x5c   : > { %628 = vmatpush.msra.mxu2 %v589_v2  ;;  %693 = vmatpush.msra.mxu3 %v605_v3 }
  0x5d   : > { %426 = vmatmul.f32.gmra.mxu0 %v354_v33  ;;  %491 = vmatmul.f32.gmra.mxu1 %v354_v33 }
  0x5e   : > { %629 = vmatpush.msra.mxu2 %v588_v4  ;;  %694 = vmatpush.msra.mxu3 %v604_v5 }
  0x60   : > { %630 = vmatpush.msra.mxu2 %v587_v6  ;;  %695 = vmatpush.msra.mxu3 %v603_v7 }
  0x62   : > { %631 = vmatpush.msra.mxu2 %v586_v9  ;;  %696 = vmatpush.msra.mxu3 %v602_v10 }
  0x64   : > { %632 = vmatpush.msra.mxu2 %v585_v11  ;;  %697 = vmatpush.msra.mxu3 %v601_v12 }
  0x65   : > { %429 = vmatmul.f32.gmra.mxu0 %v355_v34  ;;  %494 = vmatmul.f32.gmra.mxu1 %v355_v34 }
  0x6d   : > { %432 = vmatmul.f32.gmra.mxu0 %v356_v35  ;;  %497 = vmatmul.f32.gmra.mxu1 %v356_v35 }
  0x75   : > { %435 = vmatmul.f32.gmra.mxu0 %v357_v36  ;;  %500 = vmatmul.f32.gmra.mxu1 %v357_v36 }
  0x7d   : > { %438 = vmatmul.f32.gmra.mxu0 %v358_v37  ;;  %503 = vmatmul.f32.gmra.mxu1 %v358_v37 }
  0x85   : > { %441 = vmatmul.f32.gmra.mxu0 %v359_v38  ;;  %506 = vmatmul.f32.gmra.mxu1 %v359_v38 }
  0x8d   : > { %444 = vmatmul.f32.gmra.mxu0 %v360_v39  ;;  %509 = vmatmul.f32.gmra.mxu1 %v360_v39 }
  0x95   : > { %447 = vmatmul.f32.gmra.mxu0 %v361_v40  ;;  %512 = vmatmul.f32.gmra.mxu1 %v361_v40 }
  0x9d   : > { %450 = vmatmul.f32.gmra.mxu0 %v362_v47  ;;  %515 = vmatmul.f32.gmra.mxu1 %v362_v47 }
  0xa5   : > { %453 = vmatmul.f32.gmra.mxu0 %v363_v56  ;;  %518 = vmatmul.f32.gmra.mxu1 %v363_v56 }
  0xad   : > { %456 = vmatmul.f32.gmra.mxu0 %v364_v1  ;;  %521 = vmatmul.f32.gmra.mxu1 %v364_v1 }
  0xb5   : > { %459 = vmatmul.f32.gmra.mxu0 %v365_v8  ;;  %524 = vmatmul.f32.gmra.mxu1 %v365_v8 }
  0xbd   : > { %462 = vmatmul.f32.gmra.mxu0 %v366_v13  ;;  %527 = vmatmul.f32.gmra.mxu1 %v366_v13 }
  0xc5   : > { %465 = vmatmul.f32.gmra.mxu0 %v367_v14  ;;  %530 = vmatmul.f32.gmra.mxu1 %v367_v14 }
  0xcd   : > { %468 = vmatmul.f32.gmra.mxu0 %v368_v15  ;;  %533 = vmatmul.f32.gmra.mxu1 %v368_v15 }
  0xd2   : > { %v424_v19 = vpop.f32.mrf.mxu0  ;;  %v489_v20 = vpop.f32.mrf.mxu1 }
  0xd3   : > { %v425_v21 = vadd.f32 %v424_v19, %v1499_v17  ;;  %v490_v22 = vadd.f32 %v489_v20, %v1501_v18 }
  0xd5   : > { %v537_v23 = vmax.f32 %v425_v21, 0.0  ;;  %v538_v24 = vmax.f32 %v490_v22, 0.0 }
  0xd7   : > { %633 = vmatmul.f32.vlgmr.msra.gmra.mxu2 %v537_v23  ;;  %698 = vmatmul.f32.vlgmr.msra.gmra.mxu3 %v538_v24 }
  0xda   : > { %v427_v25 = vpop.f32.mrf.mxu0  ;;  %v492_v26 = vpop.f32.mrf.mxu1 }
  0xdb   : > { %v428_v27 = vadd.f32 %v427_v25, %v1499_v17  ;;  %v493_v28 = vadd.f32 %v492_v26, %v1501_v18 }
  0xdd   : > { %v539_v29 = vmax.f32 %v428_v27, 0.0  ;;  %v540_v30 = vmax.f32 %v493_v28, 0.0 }
  0xdf   : > { %636 = vmatmul.f32.gmra.mxu2 %v539_v29  ;;  %701 = vmatmul.f32.gmra.mxu3 %v540_v30 }
  0xe2   : > { %v430_v31 = vpop.f32.mrf.mxu0  ;;  %v495_v32 = vpop.f32.mrf.mxu1 }
  0xe3   : > { %v431_v33 = vadd.f32 %v430_v31, %v1499_v17  ;;  %v496_v34 = vadd.f32 %v495_v32, %v1501_v18 }
  0xe5   : > { %v541_v35 = vmax.f32 %v431_v33, 0.0  ;;  %v542_v36 = vmax.f32 %v496_v34, 0.0 }
  0xe7   : > { %639 = vmatmul.f32.gmra.mxu2 %v541_v35  ;;  %704 = vmatmul.f32.gmra.mxu3 %v542_v36 }
  0xea   : > { %v433_v37 = vpop.f32.mrf.mxu0  ;;  %v498_v38 = vpop.f32.mrf.mxu1 }
  0xeb   : > { %v434_v39 = vadd.f32 %v433_v37, %v1499_v17  ;;  %v499_v40 = vadd.f32 %v498_v38, %v1501_v18 }
  0xed   : > { %v543_v41 = vmax.f32 %v434_v39, 0.0  ;;  %v544_v42 = vmax.f32 %v499_v40, 0.0 }
  0xef   : > { %642 = vmatmul.f32.gmra.mxu2 %v543_v41  ;;  %707 = vmatmul.f32.gmra.mxu3 %v544_v42 }
  0xf2   : > { %v436_v43 = vpop.f32.mrf.mxu0  ;;  %v501_v44 = vpop.f32.mrf.mxu1 }
  0xf3   : > { %v437_v45 = vadd.f32 %v436_v43, %v1499_v17  ;;  %v502_v46 = vadd.f32 %v501_v44, %v1501_v18 }
  0xf5   : > { %v545_v47 = vmax.f32 %v437_v45, 0.0  ;;  %v546_v48 = vmax.f32 %v502_v46, 0.0 }
  0xf7   : > { %645 = vmatmul.f32.gmra.mxu2 %v545_v47  ;;  %710 = vmatmul.f32.gmra.mxu3 %v546_v48 }
  0xfa   : > { %v439_v49 = vpop.f32.mrf.mxu0  ;;  %v504_v50 = vpop.f32.mrf.mxu1 }
  0xfb   : > { %v440_v51 = vadd.f32 %v439_v49, %v1499_v17  ;;  %v505_v52 = vadd.f32 %v504_v50, %v1501_v18 }
  0xfd   : > { %v547_v53 = vmax.f32 %v440_v51, 0.0  ;;  %v548_v54 = vmax.f32 %v505_v52, 0.0 }
  0xff   : > { %648 = vmatmul.f32.gmra.mxu2 %v547_v53  ;;  %713 = vmatmul.f32.gmra.mxu3 %v548_v54  ;;  %v1538_v53 = vld [vmem:[%s1619_s4] ss:$0 sm:$0xff] }
 0x102   : > { %v442_v55 = vpop.f32.mrf.mxu0  ;;  %v507_v56 = vpop.f32.mrf.mxu1 }
 0x103   : > { %v443_v57 = vadd.f32 %v442_v55, %v1499_v17  ;;  %v508_v58 = vadd.f32 %v507_v56, %v1501_v18 }
 0x105   : > { %v549_v59 = vmax.f32 %v443_v57, 0.0  ;;  %v550_v60 = vmax.f32 %v508_v58, 0.0 }
 0x107   : > { %651 = vmatmul.f32.gmra.mxu2 %v549_v59  ;;  %716 = vmatmul.f32.gmra.mxu3 %v550_v60 }
 0x10a   : > { %v445_v61 = vpop.f32.mrf.mxu0  ;;  %v510_v62 = vpop.f32.mrf.mxu1 }
 0x10b   : > { %v446_v63 = vadd.f32 %v445_v61, %v1499_v17  ;;  %v511_v0 = vadd.f32 %v510_v62, %v1501_v18 }
 0x10d   : > { %v551_v1 = vmax.f32 %v446_v63, 0.0  ;;  %v552_v2 = vmax.f32 %v511_v0, 0.0 }
 0x10f   : > { %654 = vmatmul.f32.gmra.mxu2 %v551_v1  ;;  %719 = vmatmul.f32.gmra.mxu3 %v552_v2 }
 0x112   : > { %v448_v3 = vpop.f32.mrf.mxu0  ;;  %v513_v4 = vpop.f32.mrf.mxu1 }
 0x113   : > { %v449_v5 = vadd.f32 %v448_v3, %v1499_v17  ;;  %v514_v6 = vadd.f32 %v513_v4, %v1501_v18 }
 0x115   : > { %v553_v7 = vmax.f32 %v449_v5, 0.0  ;;  %v554_v8 = vmax.f32 %v514_v6, 0.0 }
 0x117   : > { %657 = vmatmul.f32.gmra.mxu2 %v553_v7  ;;  %722 = vmatmul.f32.gmra.mxu3 %v554_v8 }
 0x11a   : > { %v451_v9 = vpop.f32.mrf.mxu0  ;;  %v516_v10 = vpop.f32.mrf.mxu1 }
 0x11b   : > { %v452_v11 = vadd.f32 %v451_v9, %v1499_v17  ;;  %v517_v12 = vadd.f32 %v516_v10, %v1501_v18 }
 0x11d   : > { %v555_v13 = vmax.f32 %v452_v11, 0.0  ;;  %v556_v14 = vmax.f32 %v517_v12, 0.0 }
 0x11f   : > { %660 = vmatmul.f32.gmra.mxu2 %v555_v13  ;;  %725 = vmatmul.f32.gmra.mxu3 %v556_v14 }
 0x122   : > { %v454_v15 = vpop.f32.mrf.mxu0  ;;  %v519_v16 = vpop.f32.mrf.mxu1 }
 0x123   : > { %v455_v19 = vadd.f32 %v454_v15, %v1499_v17  ;;  %v520_v20 = vadd.f32 %v519_v16, %v1501_v18 }
 0x125   : > { %v557_v21 = vmax.f32 %v455_v19, 0.0  ;;  %v558_v22 = vmax.f32 %v520_v20, 0.0 }
 0x127   : > { %663 = vmatmul.f32.gmra.mxu2 %v557_v21  ;;  %728 = vmatmul.f32.gmra.mxu3 %v558_v22 }
 0x12a   : > { %v457_v23 = vpop.f32.mrf.mxu0  ;;  %v522_v24 = vpop.f32.mrf.mxu1 }
 0x12b   : > { %v458_v25 = vadd.f32 %v457_v23, %v1499_v17  ;;  %v523_v26 = vadd.f32 %v522_v24, %v1501_v18 }
 0x12d   : > { %v559_v27 = vmax.f32 %v458_v25, 0.0  ;;  %v560_v28 = vmax.f32 %v523_v26, 0.0 }
 0x12f   : > { %666 = vmatmul.f32.gmra.mxu2 %v559_v27  ;;  %731 = vmatmul.f32.gmra.mxu3 %v560_v28 }
 0x132   : > { %v460_v29 = vpop.f32.mrf.mxu0  ;;  %v525_v30 = vpop.f32.mrf.mxu1 }
 0x133   : > { %v461_v31 = vadd.f32 %v460_v29, %v1499_v17  ;;  %v526_v32 = vadd.f32 %v525_v30, %v1501_v18 }
 0x135   : > { %v561_v33 = vmax.f32 %v461_v31, 0.0  ;;  %v562_v34 = vmax.f32 %v526_v32, 0.0 }
 0x137   : > { %669 = vmatmul.f32.gmra.mxu2 %v561_v33  ;;  %734 = vmatmul.f32.gmra.mxu3 %v562_v34 }
 0x13a   : > { %v463_v35 = vpop.f32.mrf.mxu0  ;;  %v528_v36 = vpop.f32.mrf.mxu1 }
 0x13b   : > { %v464_v37 = vadd.f32 %v463_v35, %v1499_v17  ;;  %v529_v38 = vadd.f32 %v528_v36, %v1501_v18 }
 0x13d   : > { %v563_v39 = vmax.f32 %v464_v37, 0.0  ;;  %v564_v40 = vmax.f32 %v529_v38, 0.0 }
 0x13f   : > { %672 = vmatmul.f32.gmra.mxu2 %v563_v39  ;;  %737 = vmatmul.f32.gmra.mxu3 %v564_v40 }
 0x142   : > { %v466_v41 = vpop.f32.mrf.mxu0  ;;  %v531_v42 = vpop.f32.mrf.mxu1 }
 0x143   : > { %v467_v43 = vadd.f32 %v466_v41, %v1499_v17  ;;  %v532_v44 = vadd.f32 %v531_v42, %v1501_v18 }
 0x145   : > { %v565_v45 = vmax.f32 %v467_v43, 0.0  ;;  %v566_v46 = vmax.f32 %v532_v44, 0.0 }
 0x147   : > { %675 = vmatmul.f32.gmra.mxu2 %v565_v45  ;;  %740 = vmatmul.f32.gmra.mxu3 %v566_v46 }
 0x14a   : > { %v469_v47 = vpop.f32.mrf.mxu0  ;;  %v534_v48 = vpop.f32.mrf.mxu1 }
 0x14b   : > { %v470_v49 = vadd.f32 %v469_v47, %v1499_v17  ;;  %v535_v50 = vadd.f32 %v534_v48, %v1501_v18 }
 0x14d   : > { %v567_v51 = vmax.f32 %v470_v49, 0.0  ;;  %v568_v52 = vmax.f32 %v535_v50, 0.0 }
 0x14f   : > { %678 = vmatmul.f32.gmra.mxu2 %v567_v51  ;;  %743 = vmatmul.f32.gmra.mxu3 %v568_v52 }
 0x15a   : > { %v634_v54 = vpop.f32.mrf.mxu2  ;;  %v699_v55 = vpop.f32.mrf.mxu3 }
 0x15b   : > { %v700_v56 = vadd.f32 %v699_v55, %v634_v54 }
 0x15d   : > { %v802_v57 = vadd.f32 %v1538_v53, %v700_v56 }
 0x15f   : > { %818 = vst [vmem:[%s1543_s3] sm:$0xff] %v802_v57 }
 0x162   : > { %v637_v17 = vpop.f32.mrf.mxu2  ;;  %v702_v18 = vpop.f32.mrf.mxu3 }
 0x163   : > { %v703_v58 = vadd.f32 %v702_v18, %v637_v17 }
 0x165   : > { %v803_v59 = vadd.f32 %v1538_v53, %v703_v58 }
 0x167   : > { %819 = vst [vmem:[%s1543_s3 + $0x8] sm:$0xff] %v803_v59 }
 0x16a   : > { %v640_v60 = vpop.f32.mrf.mxu2  ;;  %v705_v61 = vpop.f32.mrf.mxu3 }
 0x16b   : > { %v706_v62 = vadd.f32 %v705_v61, %v640_v60 }
 0x16d   : > { %v804_v63 = vadd.f32 %v1538_v53, %v706_v62 }
 0x16f   : > { %820 = vst [vmem:[%s1543_s3 + $0x10] sm:$0xff] %v804_v63 }
 0x172   : > { %v643_v0 = vpop.f32.mrf.mxu2  ;;  %v708_v1 = vpop.f32.mrf.mxu3 }
 0x173   : > { %v709_v2 = vadd.f32 %v708_v1, %v643_v0 }
 0x175   : > { %v805_v3 = vadd.f32 %v1538_v53, %v709_v2 }
 0x177   : > { %821 = vst [vmem:[%s1543_s3 + $0x18] sm:$0xff] %v805_v3 }
 0x17a   : > { %v646_v4 = vpop.f32.mrf.mxu2  ;;  %v711_v5 = vpop.f32.mrf.mxu3 }
 0x17b   : > { %v712_v6 = vadd.f32 %v711_v5, %v646_v4 }
 0x17d   : > { %v806_v7 = vadd.f32 %v1538_v53, %v712_v6 }
 0x17f   : > { %822 = vst [vmem:[%s1543_s3 + $0x20] sm:$0xff] %v806_v7 }
 0x182   : > { %v649_v8 = vpop.f32.mrf.mxu2  ;;  %v714_v9 = vpop.f32.mrf.mxu3 }
 0x183   : > { %v715_v10 = vadd.f32 %v714_v9, %v649_v8 }
 0x185   : > { %v807_v11 = vadd.f32 %v1538_v53, %v715_v10 }
 0x187   : > { %823 = vst [vmem:[%s1543_s3 + $0x28] sm:$0xff] %v807_v11 }
 0x18a   : > { %v652_v12 = vpop.f32.mrf.mxu2  ;;  %v717_v13 = vpop.f32.mrf.mxu3 }
 0x18b   : > { %v718_v14 = vadd.f32 %v717_v13, %v652_v12 }
 0x18d   : > { %v808_v15 = vadd.f32 %v1538_v53, %v718_v14 }
 0x18f   : > { %824 = vst [vmem:[%s1543_s3 + $0x30] sm:$0xff] %v808_v15 }
 0x192   : > { %v655_v16 = vpop.f32.mrf.mxu2  ;;  %v720_v19 = vpop.f32.mrf.mxu3 }
 0x193   : > { %v721_v20 = vadd.f32 %v720_v19, %v655_v16 }
 0x195   : > { %v809_v21 = vadd.f32 %v1538_v53, %v721_v20 }
 0x197   : > { %825 = vst [vmem:[%s1543_s3 + $0x38] sm:$0xff] %v809_v21 }
 0x19a   : > { %v658_v22 = vpop.f32.mrf.mxu2  ;;  %v723_v23 = vpop.f32.mrf.mxu3 }
 0x19b   : > { %v724_v24 = vadd.f32 %v723_v23, %v658_v22 }
 0x19d   : > { %v810_v25 = vadd.f32 %v1538_v53, %v724_v24 }
 0x19f   : > { %826 = vst [vmem:[%s1543_s3 + $0x40] sm:$0xff] %v810_v25 }
 0x1a2   : > { %v661_v26 = vpop.f32.mrf.mxu2  ;;  %v726_v27 = vpop.f32.mrf.mxu3 }
 0x1a3   : > { %v727_v28 = vadd.f32 %v726_v27, %v661_v26 }
 0x1a5   : > { %v811_v29 = vadd.f32 %v1538_v53, %v727_v28 }
 0x1a7   : > { %827 = vst [vmem:[%s1543_s3 + $0x48] sm:$0xff] %v811_v29 }
 0x1aa   : > { %v664_v30 = vpop.f32.mrf.mxu2  ;;  %v729_v31 = vpop.f32.mrf.mxu3 }
 0x1ab   : > { %v730_v32 = vadd.f32 %v729_v31, %v664_v30 }
 0x1ad   : > { %v812_v33 = vadd.f32 %v1538_v53, %v730_v32 }
 0x1af   : > { %828 = vst [vmem:[%s1543_s3 + $0x50] sm:$0xff] %v812_v33 }
 0x1b2   : > { %v667_v34 = vpop.f32.mrf.mxu2  ;;  %v732_v35 = vpop.f32.mrf.mxu3 }
 0x1b3   : > { %v733_v36 = vadd.f32 %v732_v35, %v667_v34 }
 0x1b5   : > { %v813_v37 = vadd.f32 %v1538_v53, %v733_v36 }
 0x1b7   : > { %829 = vst [vmem:[%s1543_s3 + $0x58] sm:$0xff] %v813_v37 }
 0x1ba   : > { %v670_v38 = vpop.f32.mrf.mxu2  ;;  %v735_v39 = vpop.f32.mrf.mxu3 }
 0x1bb   : > { %v736_v40 = vadd.f32 %v735_v39, %v670_v38 }
 0x1bd   : > { %v814_v41 = vadd.f32 %v1538_v53, %v736_v40 }
 0x1bf   : > { %830 = vst [vmem:[%s1543_s3 + $0x60] sm:$0xff] %v814_v41 }
 0x1c2   : > { %v673_v42 = vpop.f32.mrf.mxu2  ;;  %v738_v43 = vpop.f32.mrf.mxu3 }
 0x1c3   : > { %v739_v44 = vadd.f32 %v738_v43, %v673_v42 }
 0x1c5   : > { %v815_v45 = vadd.f32 %v1538_v53, %v739_v44 }
 0x1c7   : > { %831 = vst [vmem:[%s1543_s3 + $0x68] sm:$0xff] %v815_v45 }
 0x1ca   : > { %v676_v46 = vpop.f32.mrf.mxu2  ;;  %v741_v47 = vpop.f32.mrf.mxu3 }
 0x1cb   : > { %v742_v48 = vadd.f32 %v741_v47, %v676_v46 }
 0x1cd   : > { %v816_v49 = vadd.f32 %v1538_v53, %v742_v48 }
 0x1cf   : > { %832 = vst [vmem:[%s1543_s3 + $0x70] sm:$0xff] %v816_v49 }
 0x1d2   : > { %v679_v50 = vpop.f32.mrf.mxu2  ;;  %v744_v51 = vpop.f32.mrf.mxu3 }
 0x1d3   : > { %v745_v52 = vadd.f32 %v744_v51, %v679_v50 }
 0x1d5   : > { %v817_v54 = vadd.f32 %v1538_v53, %v745_v52 }
 0x1d7   : > { %833 = vst [vmem:[%s1543_s3 + $0x78] sm:$0xff] %v817_v54 }
 0x1d8   : > { %1236 = shalt.err (!%p1233_p0)
}
 0x1d9   : > { %s1308_s10 = smov 128   ;;  %s1309_s11 = smov 8  }
 0x1da   : > { %1003 = dma.vmem_to_hbm [thread:$0]  (%p1432_p3), %s848_s7, 2048, %s850_s16, %s835_s25, %s1308_s10, %s1308_s10, %s1309_s11  }
 0x1db PF: > { %s864_s1 = sand.u32 1, %s1279_s18   ;;  %p1020_p5 = pnand %p972_p11, %p1389_p6 }
 0x1dc   : > { %s865_s2 = scalar_lea.sflag [#allocation5], %s864_s1 }
 0x1dd   : > { %p1021_p7 = pneg %p1020_p5 }
 0x1df   : > { %1274 = dma.done.wait (%p1021_p7), %s865_s2, 2048  }
 0x1e0   : > { %1276 = vsyncadd (%p1021_p7), %s865_s2, 4294965248  ;;  %s23_s23 = sadd.s32 1, %s1299_s23   ;;  %s1639_s18 = smov %s1283_s19 }
 0x1e1   : > { %p20_p9 = scmp.ge.s32.totalorder %s23_s23, 4   ;;  %s1640_s19 = smov %s1287_s20 }
 0x1e2   : > { %s1641_s20 = smov %s1448_s27  ;;  %s1642_s21 = smov %s1295_s22 }
 0x1e3   : > { %s1643_s22 = smov %s1645_s15  ;;  %22 = sbr.rel (!%p20_p9) target bundleno = 12 (0xc), region = 108 }
 0x1e8   :  { %871 = vsyncpa [#allocation4], 1 }
 0x1e9   :  { %873 = vsyncpa [#allocation4 + $0x1], 1 }
 0x1ea   :  { %874 = vsyncpa [#allocation7], 1 }
 0x1eb   :  { %875 = vsyncpa [#allocation10], 1 }
 0x1ec   :  { %876 = vsyncpa [#allocation5], 1 }
 0x1ed   :  { %878 = vsyncpa [#allocation5 + $0x1], 1 }

// kernel: _ffn_call.1
= control target key start
LH: loop header
LB: loop body
LE: loop exit
PB: predicated region body
PF: predicated region fallthrough
CT: control target
= control target key end

     0   :  { %s1615_s0 = inlined_call_operand.hbm [shape: f32[250,128], index: 0, kind: input, shape index: {}]   ;;  %s1616_s1 = inlined_call_operand.hbm [shape: f32[128,256], index: 1, kind: input, shape index: {}]   ;;  %s1617_s2 = inlined_call_operand.hbm [shape: f32[1,256], index: 2, kind: input, shape index: {}]   ;;  %s1618_s3 = inlined_call_operand.hbm [shape: f32[256,128], index: 3, kind: input, shape index: {}]   ;;  %s1619_s4 = inlined_call_operand.vmem [shape: f32[1,128], index: 4, kind: input, shape index: {}]   ;;  %s1620_s5 = inlined_call_operand.hbm [shape: f32[250,128], index: 5, kind: output, shape index: {}]  }
   0x1   :  { %1623 = sst [smem:[#allocation16_spill]] %s1616_s1 }
   0x2   :  { %1624 = sst [smem:[#allocation17_spill]] %s1617_s2 }
   0x3   :  { %1625 = sst [smem:[#allocation18_spill]] %s1618_s3 }
   0x4   :  { %10 = vsyncpa [#allocation4], 0 }
   0x5   :  { %12 = vsyncpa [#allocation4 + $0x1], 0 }
   0x6   :  { %13 = vsyncpa [#allocation7], 0 }
   0x7   :  { %14 = vsyncpa [#allocation10], 0 }
   0x8   :  { %15 = vsyncpa [#allocation5], 0 }
   0x9   :  { %17 = vsyncpa [#allocation5 + $0x1], 0  ;;  %s1340_s18 = smov 0   ;;  %s1342_s19 = smov 0  }
   0xa   :  { %s1344_s20 = smov 0   ;;  %s1346_s21 = smov 0  }
   0xb   :  { %s1348_s22 = smov 0   ;;  %s1350_s23 = smov 0  }
   0xc LB: > { %s966_s24 = sadd.s32 4294967295, %s1299_s23   ;;  %s967_s25 = sadd.s32 4294967294, %s1299_s23   ;;  %s1299_s23 = sphi %s1350_s23, %s23_s23   ;;  %s1295_s22 = sphi %s1348_s22, %s1643_s22   ;;  %s1291_s21 = sphi %s1346_s21, %s1642_s21   ;;  %s1287_s20 = sphi %s1344_s20, %s1641_s20   ;;  %s1283_s19 = sphi %s1342_s19, %s1640_s19   ;;  %s1279_s18 = sphi %s1340_s18, %s1639_s18  }
   0xd   : > { %p55_p0 = scmp.ne.s32.totalorder %s1283_s19, %s1279_s18  ;;  %p1374_p1 = scmp.eq.s32.totalorder %s966_s24, 0 }
   0xe   : > { %p1378_p2 = scmp.eq.s32.totalorder %s966_s24, 1  ;;  %p184_p3 = scmp.eq.s32.totalorder %s967_s25, 1 }
   0xf   : > { %p1384_p4 = por %p1374_p1, %p55_p0  ;;  %p968_p5 = scmp.ge.s32.totalorder %s1299_s23, 1 }
  0x10   : > { %p1389_p6 = por %p184_p3, %p55_p0  ;;  %p191_p7 = scmp.lt.s32.totalorder %s1299_s23, 3 }
  0x11   : > { %s1630_s1 = sld [smem:[#allocation16_spill]]  ;;  %s1301_s9 = smov [#allocation6]  }
  0x12   : > { %p1397_p8 = pnand %p968_p5, %p191_p7  ;;  %s207_s10 = sshll.u32 %s1301_s9, 4  ;;  %s208_s10 = int_to_ptr.vmem [resolvable:$true] %s207_s10 }
  0x13   : > { %p972_p11 = scmp.ge.s32.totalorder %s1299_s23, 2  ;;  %s1633_s2 = sld [smem:[#allocation17_spill]] }
  0x14   : > { %p1005_p9 = pneg %p1397_p8  ;;  %s1302_s15 = smov 256  }
  0x15   : > { %s1303_s16 = smov 16   ;;  %s1304_s17 = smov [#allocation8]  }
  0x16   : > { %p1405_p10 = pnand %p1005_p9, %p1374_p1  ;;  %s224_s24 = sshll.u32 %s1304_s17, 4  ;;  %s225_s24 = int_to_ptr.vmem [resolvable:$true] %s224_s24 }
  0x17   : > { %s205_s7 = sshll.u32 %s1630_s1, 4  ;;  %s1634_s3 = sld [smem:[#allocation18_spill]]  ;;  %s206_s7 = int_to_ptr.hbm [resolvable:$true] %s205_s7 }
  0x18   : > { %1008 = dma.hbm_to_vmem [thread:$0]  (!%p1405_p10), %s206_s7, 4096, %s208_s10, [#allocation7], %s1302_s15, %s1302_s15, %s1303_s16  }
  0x19   : > { %s222_s14 = sshll.u32 %s1633_s2, 4  ;;  %s1305_s9 = smov [#allocation9]   ;;  %s223_s14 = int_to_ptr.hbm [resolvable:$true] %s222_s14 }
  0x1a   : > { %1011 = dma.hbm_to_vmem [thread:$0]  (!%p1405_p10), %s223_s14, 32, %s225_s24, [#allocation7]  }
  0x1b   : > { %s238_s12 = sshll.u32 %s1305_s9, 4  ;;  %s1621_s13 = smov 128   ;;  %s239_s12 = int_to_ptr.vmem [resolvable:$true] %s238_s12 }
  0x1c   : > { %s1622_s7 = smov 8   ;;  %s42_s10 = sadd.s32 1, %s1287_s20 }
  0x1d   : > { %s236_s6 = sshll.u32 %s1634_s3, 4  ;;  %s35_s15 = sadd.s32 1, %s1295_s22  ;;  %s237_s6 = int_to_ptr.hbm [resolvable:$true] %s236_s6 }
  0x1e   : > { %1014 = dma.hbm_to_vmem [thread:$0]  (!%p1405_p10), %s237_s6, 4096, %s239_s12, [#allocation10], %s1621_s13, %s1621_s13, %s1622_s7  }
  0x1f   : > { %p49_p12 = scmp.ne.s32.totalorder %s1287_s20, %s1283_s19  ;;  %p37_p13 = scmp.ge.s32.totalorder %s35_s15, 2 }
  0x20   : > { %p50_p0 = scmp.eq.s32.totalorder %s1299_s23, 0  ;;  %p1026_p5 = scmp.lt.s32.totalorder %s1299_s23, 2 }
  0x21   : > { %p1432_p3 = por %p1378_p2, %p49_p12  ;;  %s1645_s15 = smov (%p37_p13, %s35_s15), 0 }
  0x22   : > { %p1439_p7 = por %p50_p0, %p49_p12  ;;  %s255_s16 = sand.u32 1, %s1287_s20  }
  0x23   : > { %s39_s17 = ssub.s32 %s1295_s22, %s1645_s15  ;;  %s973_s24 = sshll.u32 %s255_s16, 7 }
  0x24   : > { %p40_p9 = scmp.eq.s32.totalorder %s39_s17, 0  ;;  %s987_s25 = sshll.u32 %s1295_s22, 7 }
  0x25   : > { %s264_s9 = scalar_lea.hbm %s1615_s0, %s987_s25  ;;  %s259_s12 = scalar_lea.vmem [#allocation3], %s973_s24 }
  0x26   : > { %s1448_s27 = scalar_select %p40_p9, %s1287_s20, %s42_s10  }
  0x27   : > { %s267_s13 = sshll.u32 %s259_s12, 4  ;;  %s265_s7 = sshll.u32 %s264_s9, 4  ;;  %s268_s13 = int_to_ptr.vmem [resolvable:$true] %s267_s13  ;;  %s266_s7 = int_to_ptr.hbm [resolvable:$true] %s265_s7 }
  0x28   : > { %p1016_p2 = pnand %p1026_p5, %p1439_p7  ;;  %s256_s1 = scalar_lea.sflag [#allocation4], %s255_s16 }
  0x29   : > { %s1637_s2 = smov 8   ;;  %s1638_s3 = smov 128  }
  0x2a   : > { %1018 = dma.hbm_to_vmem [thread:$0]  (!%p1016_p2), %s266_s7, 2048, %s268_s13, %s256_s1, %s1638_s3, %s1638_s3, %s1637_s2  }
  0x2b   : > { %279 = sbr.rel (%p1397_p8) target bundleno = 475 (0x1db), region = 40  ;;  %s1463_s10 = sand.u32 (!%p1397_p8), 1, %s1283_s19  }
  0x2c   : > { %s977_s17 = sshll.u32 (!%p1397_p8), %s1463_s10, 7  ;;  %s282_s24 = scalar_lea.sflag (!%p1397_p8), [#allocation4], %s1463_s10 }
  0x2d   : > { %s1469_s11 = scalar_lea.vmem (!%p1397_p8), [#allocation3], %s977_s17 }
  0x30   : > { %1262 = dma.done.wait (%p1384_p4), %s282_s24, 2048  }
  0x31   : > { %1264 = vsyncadd (%p1384_p4), %s282_s24, 4294965248 }
  0x32   : > { %1266 = dma.done.wait (%p1374_p1), [#allocation7], 4128  }
  0x33   : > { %1268 = vsyncadd (%p1374_p1), [#allocation7], 4294963168 }
  0x34   : > { %1270 = dma.done.wait (%p1374_p1), [#allocation10], 4096  }
  0x35   : > { %1272 = vsyncadd (%p1374_p1), [#allocation10], 4294963200  ;;  %v399_v0 = vld [vmem:[#allocation6 + $0xf0] sm:$0xff]  ;;  %v400_v1 = vld [vmem:[#allocation6 + $0xf8] sm:$0xff]  ;;  %s1543_s3 = scalar_lea.vmem [#allocation11], %s977_s17  ;;  %s988_s26 = sshll.u32 %s1291_s21, 7 }
  0x36   : > { %v397_v2 = vld [vmem:[#allocation6 + $0xe0] sm:$0xff]  ;;  %407 = vmatpush.msra.mxu0 %v399_v0  ;;  %472 = vmatpush.msra.mxu1 %v400_v1  ;;  %v398_v3 = vld [vmem:[#allocation6 + $0xe8] sm:$0xff]  ;;  %v395_v4 = vld [vmem:[#allocation6 + $0xd0] sm:$0xff]  ;;  %s846_s13 = scalar_lea.hbm %s1620_s5, %s988_s26  ;;  %s847_s7 = sshll.u32 %s1543_s3, 4  ;;  %s848_s7 = int_to_ptr.vmem [resolvable:$true] %s847_s7 }
  0x37   : > { %v396_v5 = vld [vmem:[#allocation6 + $0xd8] sm:$0xff]  ;;  %v393_v6 = vld [vmem:[#allocation6 + $0xc0] sm:$0xff]  ;;  %v394_v7 = vld [vmem:[#allocation6 + $0xc8] sm:$0xff]  ;;  %s849_s16 = sshll.u32 %s846_s13, 4  ;;  %s835_s25 = scalar_lea.sflag [#allocation5], %s1463_s10  ;;  %s850_s16 = int_to_ptr.hbm [resolvable:$true] %s849_s16 }
  0x38   : > { %408 = vmatpush.msra.mxu0 %v397_v2  ;;  %473 = vmatpush.msra.mxu1 %v398_v3  ;;  %v391_v8 = vld [vmem:[#allocation6 + $0xb0] sm:$0xff]  ;;  %v392_v9 = vld [vmem:[#allocation6 + $0xb8] sm:$0xff]  ;;  %v389_v10 = vld [vmem:[#allocation6 + $0xa0] sm:$0xff]  ;;  %s1223_s21 = sshra.s32 %s850_s16, 4  ;;  %s1229_s12 = scalar_lea.hbm %s1620_s5, 256  ;;  %s1224_s21 = int_to_ptr.hbm [resolvable:$true] %s1223_s21 }
  0x39   : > { %v390_v11 = vld [vmem:[#allocation6 + $0xa8] sm:$0xff]  ;;  %v387_v12 = vld [vmem:[#allocation6 + $0x90] sm:$0xff]  ;;  %v388_v13 = vld [vmem:[#allocation6 + $0x98] sm:$0xff]  ;;  %s1225_s30 = scalar_lea.hbm %s1224_s21, 128  ;;  %p1230_p10 = scmp.lt.s32.totalorder %s1224_s21, %s1620_s5 }
  0x3a   : > { %409 = vmatpush.msra.mxu0 %v395_v4  ;;  %474 = vmatpush.msra.mxu1 %v396_v5  ;;  %v385_v14 = vld [vmem:[#allocation6 + $0x80] sm:$0xff]  ;;  %v386_v15 = vld [vmem:[#allocation6 + $0x88] sm:$0xff]  ;;  %v383_v16 = vld [vmem:[#allocation6 + $0x70] sm:$0xff]  ;;  %p1226_p1 = scmp.ne.s32.totalorder %s1224_s21, %s1225_s30  ;;  %p1231_p12 = scmp.lt.s32.totalorder %s1229_s12, %s1225_s30 }
  0x3b   : > { %v384_v17 = vld [vmem:[#allocation6 + $0x78] sm:$0xff]  ;;  %v381_v18 = vld [vmem:[#allocation6 + $0x60] sm:$0xff]  ;;  %v382_v19 = vld [vmem:[#allocation6 + $0x68] sm:$0xff] }
  0x3c   : > { %410 = vmatpush.msra.mxu0 %v393_v6  ;;  %475 = vmatpush.msra.mxu1 %v394_v7  ;;  %v379_v20 = vld [vmem:[#allocation6 + $0x50] sm:$0xff]  ;;  %v380_v21 = vld [vmem:[#allocation6 + $0x58] sm:$0xff]  ;;  %v377_v22 = vld [vmem:[#allocation6 + $0x40] sm:$0xff]  ;;  %p1227_p4 = pnand %p1226_p1, %p1432_p3  ;;  %p1232_p13 = por %p1231_p12, %p1230_p10 }
  0x3d   : > { %v378_v23 = vld [vmem:[#allocation6 + $0x48] sm:$0xff]  ;;  %v375_v24 = vld [vmem:[#allocation6 + $0x30] sm:$0xff]  ;;  %v376_v25 = vld [vmem:[#allocation6 + $0x38] sm:$0xff] }
  0x3e   : > { %411 = vmatpush.msra.mxu0 %v391_v8  ;;  %476 = vmatpush.msra.mxu1 %v392_v9  ;;  %v373_v26 = vld [vmem:[#allocation6 + $0x20] sm:$0xff]  ;;  %v374_v27 = vld [vmem:[#allocation6 + $0x28] sm:$0xff]  ;;  %v371_v28 = vld [vmem:[#allocation6 + $0x10] sm:$0xff]  ;;  %p1228_p8 = pneg %p1227_p4 }
  0x3f   : > { %v372_v29 = vld [vmem:[#allocation6 + $0x18] sm:$0xff]  ;;  %v369_v30 = vld [vmem:[#allocation6] sm:$0xff]  ;;  %v370_v31 = vld [vmem:[#allocation6 + $0x8] sm:$0xff] }
  0x40   : > { %412 = vmatpush.msra.mxu0 %v389_v10  ;;  %477 = vmatpush.msra.mxu1 %v390_v11  ;;  %v353_v32 = vld [vmem:[%s1469_s11] sm:$0xff]  ;;  %v354_v33 = vld [vmem:[%s1469_s11 + $0x8] sm:$0xff]  ;;  %v355_v34 = vld [vmem:[%s1469_s11 + $0x10] sm:$0xff]  ;;  %p1233_p0 = pnand %p1232_p13, %p1228_p8 }
  0x41   : > { %v356_v35 = vld [vmem:[%s1469_s11 + $0x18] sm:$0xff]  ;;  %v357_v36 = vld [vmem:[%s1469_s11 + $0x20] sm:$0xff]  ;;  %v358_v37 = vld [vmem:[%s1469_s11 + $0x28] sm:$0xff] }
  0x42   : > { %413 = vmatpush.msra.mxu0 %v387_v12  ;;  %478 = vmatpush.msra.mxu1 %v388_v13  ;;  %v359_v38 = vld [vmem:[%s1469_s11 + $0x30] sm:$0xff]  ;;  %v360_v39 = vld [vmem:[%s1469_s11 + $0x38] sm:$0xff]  ;;  %v361_v40 = vld [vmem:[%s1469_s11 + $0x40] sm:$0xff] }
  0x43   : > { %v600_v41 = vld [vmem:[#allocation9 + $0x78] sm:$0xff]  ;;  %v599_v43 = vld [vmem:[#allocation9 + $0x70] sm:$0xff]  ;;  %v598_v45 = vld [vmem:[#allocation9 + $0x68] sm:$0xff] }
  0x44   : > { %414 = vmatpush.msra.mxu0 %v385_v14  ;;  %479 = vmatpush.msra.mxu1 %v386_v15  ;;  %v616_v42 = vld [vmem:[#allocation9 + $0xf8] sm:$0xff]  ;;  %v615_v44 = vld [vmem:[#allocation9 + $0xf0] sm:$0xff]  ;;  %v614_v46 = vld [vmem:[#allocation9 + $0xe8] sm:$0xff] }
  0x45   : > { %617 = vmatpush.msra.mxu2 %v600_v41  ;;  %682 = vmatpush.msra.mxu3 %v616_v42  ;;  %v362_v47 = vld [vmem:[%s1469_s11 + $0x48] sm:$0xff]  ;;  %v596_v50 = vld [vmem:[#allocation9 + $0x58] sm:$0xff]  ;;  %v595_v52 = vld [vmem:[#allocation9 + $0x50] sm:$0xff] }
  0x46   : > { %415 = vmatpush.msra.mxu0 %v383_v16  ;;  %480 = vmatpush.msra.mxu1 %v384_v17  ;;  %v597_v48 = vld [vmem:[#allocation9 + $0x60] sm:$0xff]  ;;  %v612_v51 = vld [vmem:[#allocation9 + $0xd8] sm:$0xff]  ;;  %v611_v53 = vld [vmem:[#allocation9 + $0xd0] sm:$0xff] }
  0x47   : > { %618 = vmatpush.msra.mxu2 %v599_v43  ;;  %683 = vmatpush.msra.mxu3 %v615_v44  ;;  %v613_v49 = vld [vmem:[#allocation9 + $0xe0] sm:$0xff]  ;;  %v594_v54 = vld [vmem:[#allocation9 + $0x48] sm:$0xff]  ;;  %v592_v59 = vld [vmem:[#allocation9 + $0x38] sm:$0xff] }
  0x48   : > { %416 = vmatpush.msra.mxu0 %v381_v18  ;;  %481 = vmatpush.msra.mxu1 %v382_v19  ;;  %v610_v55 = vld [vmem:[#allocation9 + $0xc8] sm:$0xff]  ;;  %v593_v57 = vld [vmem:[#allocation9 + $0x40] sm:$0xff]  ;;  %v608_v60 = vld [vmem:[#allocation9 + $0xb8] sm:$0xff] }
  0x49   : > { %619 = vmatpush.msra.mxu2 %v598_v45  ;;  %684 = vmatpush.msra.mxu3 %v614_v46  ;;  %v363_v56 = vld [vmem:[%s1469_s11 + $0x50] sm:$0xff]  ;;  %v609_v58 = vld [vmem:[#allocation9 + $0xc0] sm:$0xff]  ;;  %v364_v1 = vld [vmem:[%s1469_s11 + $0x58] sm:$0xff] }
  0x4a   : > { %417 = vmatpush.msra.mxu0 %v379_v20  ;;  %482 = vmatpush.msra.mxu1 %v380_v21  ;;  %v591_v61 = vld [vmem:[#allocation9 + $0x30] sm:$0xff]  ;;  %v590_v63 = vld [vmem:[#allocation9 + $0x28] sm:$0xff]  ;;  %v589_v2 = vld [vmem:[#allocation9 + $0x20] sm:$0xff] }
  0x4b   : > { %620 = vmatpush.msra.mxu2 %v597_v48  ;;  %685 = vmatpush.msra.mxu3 %v613_v49  ;;  %v607_v62 = vld [vmem:[#allocation9 + $0xb0] sm:$0xff]  ;;  %v606_v0 = vld [vmem:[#allocation9 + $0xa8] sm:$0xff]  ;;  %v605_v3 = vld [vmem:[#allocation9 + $0xa0] sm:$0xff] }
  0x4c   : > { %418 = vmatpush.msra.mxu0 %v377_v22  ;;  %483 = vmatpush.msra.mxu1 %v378_v23  ;;  %v588_v4 = vld [vmem:[#allocation9 + $0x18] sm:$0xff]  ;;  %v587_v6 = vld [vmem:[#allocation9 + $0x10] sm:$0xff]  ;;  %v586_v9 = vld [vmem:[#allocation9 + $0x8] sm:$0xff] }
  0x4d   : > { %621 = vmatpush.msra.mxu2 %v596_v50  ;;  %686 = vmatpush.msra.mxu3 %v612_v51  ;;  %v604_v5 = vld [vmem:[#allocation9 + $0x98] sm:$0xff]  ;;  %v603_v7 = vld [vmem:[#allocation9 + $0x90] sm:$0xff]  ;;  %v602_v10 = vld [vmem:[#allocation9 + $0x88] sm:$0xff] }
  0x4e   : > { %419 = vmatpush.msra.mxu0 %v375_v24  ;;  %484 = vmatpush.msra.mxu1 %v376_v25  ;;  %v365_v8 = vld [vmem:[%s1469_s11 + $0x60] sm:$0xff]  ;;  %v366_v13 = vld [vmem:[%s1469_s11 + $0x68] sm:$0xff]  ;;  %v367_v14 = vld [vmem:[%s1469_s11 + $0x70] sm:$0xff] }
  0x4f   : > { %622 = vmatpush.msra.mxu2 %v595_v52  ;;  %687 = vmatpush.msra.mxu3 %v611_v53  ;;  %v585_v11 = vld [vmem:[#allocation9] sm:$0xff]  ;;  %v368_v15 = vld [vmem:[%s1469_s11 + $0x78] sm:$0xff]  ;;  %v401_v16 = vld [vmem:[#allocation8] sm:$0x3] }
  0x50   : > { %420 = vmatpush.msra.mxu0 %v373_v26  ;;  %485 = vmatpush.msra.mxu1 %v374_v27  ;;  %v601_v12 = vld [vmem:[#allocation9 + $0x80] sm:$0xff]  ;;  %v1499_v17 = vperm.slane %v401_v16, 0  ;;  %v1501_v18 = vperm.slane %v401_v16, 1 }
  0x51   : > { %623 = vmatpush.msra.mxu2 %v594_v54  ;;  %688 = vmatpush.msra.mxu3 %v610_v55 }
  0x52   : > { %421 = vmatpush.msra.mxu0 %v371_v28  ;;  %486 = vmatpush.msra.mxu1 %v372_v29 }
  0x53   : > { %624 = vmatpush.msra.mxu2 %v593_v57  ;;  %689 = vmatpush.msra.mxu3 %v609_v58 }
  0x54   : > { %422 = vmatpush.msra.mxu0 %v369_v30  ;;  %487 = vmatpush.msra.mxu1 %v370_v31 }
  0x55   : > { %423 = vmatmul.f32.vlgmr.msra.gmra.mxu0 %v353_v32  ;;  %488 = vmatmul.f32.vlgmr.msra.gmra.mxu1 %v353_v32 }
  0x56   : > { %625 = vmatpush.msra.mxu2 %v592_v59  ;;  %690 = vmatpush.msra.mxu3 %v608_v60 }
  0x58   : > { %626 = vmatpush.msra.mxu2 %v591_v61  ;;  %691 = vmatpush.msra.mxu3 %v607_v62 }
  0x5a   : > { %627 = vmatpush.msra.mxu2 %v590_v63  ;;  %692 = vmatpush.msra.mxu3 %v606_v0 }
  0x5c   : > { %628 = vmatpush.msra.mxu2 %v589_v2  ;;  %693 = vmatpush.msra.mxu3 %v605_v3 }
  0x5d   : > { %426 = vmatmul.f32.gmra.mxu0 %v354_v33  ;;  %491 = vmatmul.f32.gmra.mxu1 %v354_v33 }
  0x5e   : > { %629 = vmatpush.msra.mxu2 %v588_v4  ;;  %694 = vmatpush.msra.mxu3 %v604_v5 }
  0x60   : > { %630 = vmatpush.msra.mxu2 %v587_v6  ;;  %695 = vmatpush.msra.mxu3 %v603_v7 }
  0x62   : > { %631 = vmatpush.msra.mxu2 %v586_v9  ;;  %696 = vmatpush.msra.mxu3 %v602_v10 }
  0x64   : > { %632 = vmatpush.msra.mxu2 %v585_v11  ;;  %697 = vmatpush.msra.mxu3 %v601_v12 }
  0x65   : > { %429 = vmatmul.f32.gmra.mxu0 %v355_v34  ;;  %494 = vmatmul.f32.gmra.mxu1 %v355_v34 }
  0x6d   : > { %432 = vmatmul.f32.gmra.mxu0 %v356_v35  ;;  %497 = vmatmul.f32.gmra.mxu1 %v356_v35 }
  0x75   : > { %435 = vmatmul.f32.gmra.mxu0 %v357_v36  ;;  %500 = vmatmul.f32.gmra.mxu1 %v357_v36 }
  0x7d   : > { %438 = vmatmul.f32.gmra.mxu0 %v358_v37  ;;  %503 = vmatmul.f32.gmra.mxu1 %v358_v37 }
  0x85   : > { %441 = vmatmul.f32.gmra.mxu0 %v359_v38  ;;  %506 = vmatmul.f32.gmra.mxu1 %v359_v38 }
  0x8d   : > { %444 = vmatmul.f32.gmra.mxu0 %v360_v39  ;;  %509 = vmatmul.f32.gmra.mxu1 %v360_v39 }
  0x95   : > { %447 = vmatmul.f32.gmra.mxu0 %v361_v40  ;;  %512 = vmatmul.f32.gmra.mxu1 %v361_v40 }
  0x9d   : > { %450 = vmatmul.f32.gmra.mxu0 %v362_v47  ;;  %515 = vmatmul.f32.gmra.mxu1 %v362_v47 }
  0xa5   : > { %453 = vmatmul.f32.gmra.mxu0 %v363_v56  ;;  %518 = vmatmul.f32.gmra.mxu1 %v363_v56 }
  0xad   : > { %456 = vmatmul.f32.gmra.mxu0 %v364_v1  ;;  %521 = vmatmul.f32.gmra.mxu1 %v364_v1 }
  0xb5   : > { %459 = vmatmul.f32.gmra.mxu0 %v365_v8  ;;  %524 = vmatmul.f32.gmra.mxu1 %v365_v8 }
  0xbd   : > { %462 = vmatmul.f32.gmra.mxu0 %v366_v13  ;;  %527 = vmatmul.f32.gmra.mxu1 %v366_v13 }
  0xc5   : > { %465 = vmatmul.f32.gmra.mxu0 %v367_v14  ;;  %530 = vmatmul.f32.gmra.mxu1 %v367_v14 }
  0xcd   : > { %468 = vmatmul.f32.gmra.mxu0 %v368_v15  ;;  %533 = vmatmul.f32.gmra.mxu1 %v368_v15 }
  0xd2   : > { %v424_v19 = vpop.f32.mrf.mxu0  ;;  %v489_v20 = vpop.f32.mrf.mxu1 }
  0xd3   : > { %v425_v21 = vadd.f32 %v424_v19, %v1499_v17  ;;  %v490_v22 = vadd.f32 %v489_v20, %v1501_v18 }
  0xd5   : > { %v537_v23 = vmax.f32 %v425_v21, 0.0  ;;  %v538_v24 = vmax.f32 %v490_v22, 0.0 }
  0xd7   : > { %633 = vmatmul.f32.vlgmr.msra.gmra.mxu2 %v537_v23  ;;  %698 = vmatmul.f32.vlgmr.msra.gmra.mxu3 %v538_v24 }
  0xda   : > { %v427_v25 = vpop.f32.mrf.mxu0  ;;  %v492_v26 = vpop.f32.mrf.mxu1 }
  0xdb   : > { %v428_v27 = vadd.f32 %v427_v25, %v1499_v17  ;;  %v493_v28 = vadd.f32 %v492_v26, %v1501_v18 }
  0xdd   : > { %v539_v29 = vmax.f32 %v428_v27, 0.0  ;;  %v540_v30 = vmax.f32 %v493_v28, 0.0 }
  0xdf   : > { %636 = vmatmul.f32.gmra.mxu2 %v539_v29  ;;  %701 = vmatmul.f32.gmra.mxu3 %v540_v30 }
  0xe2   : > { %v430_v31 = vpop.f32.mrf.mxu0  ;;  %v495_v32 = vpop.f32.mrf.mxu1 }
  0xe3   : > { %v431_v33 = vadd.f32 %v430_v31, %v1499_v17  ;;  %v496_v34 = vadd.f32 %v495_v32, %v1501_v18 }
  0xe5   : > { %v541_v35 = vmax.f32 %v431_v33, 0.0  ;;  %v542_v36 = vmax.f32 %v496_v34, 0.0 }
  0xe7   : > { %639 = vmatmul.f32.gmra.mxu2 %v541_v35  ;;  %704 = vmatmul.f32.gmra.mxu3 %v542_v36 }
  0xea   : > { %v433_v37 = vpop.f32.mrf.mxu0  ;;  %v498_v38 = vpop.f32.mrf.mxu1 }
  0xeb   : > { %v434_v39 = vadd.f32 %v433_v37, %v1499_v17  ;;  %v499_v40 = vadd.f32 %v498_v38, %v1501_v18 }
  0xed   : > { %v543_v41 = vmax.f32 %v434_v39, 0.0  ;;  %v544_v42 = vmax.f32 %v499_v40, 0.0 }
  0xef   : > { %642 = vmatmul.f32.gmra.mxu2 %v543_v41  ;;  %707 = vmatmul.f32.gmra.mxu3 %v544_v42 }
  0xf2   : > { %v436_v43 = vpop.f32.mrf.mxu0  ;;  %v501_v44 = vpop.f32.mrf.mxu1 }
  0xf3   : > { %v437_v45 = vadd.f32 %v436_v43, %v1499_v17  ;;  %v502_v46 = vadd.f32 %v501_v44, %v1501_v18 }
  0xf5   : > { %v545_v47 = vmax.f32 %v437_v45, 0.0  ;;  %v546_v48 = vmax.f32 %v502_v46, 0.0 }
  0xf7   : > { %645 = vmatmul.f32.gmra.mxu2 %v545_v47  ;;  %710 = vmatmul.f32.gmra.mxu3 %v546_v48 }
  0xfa   : > { %v439_v49 = vpop.f32.mrf.mxu0  ;;  %v504_v50 = vpop.f32.mrf.mxu1 }
  0xfb   : > { %v440_v51 = vadd.f32 %v439_v49, %v1499_v17  ;;  %v505_v52 = vadd.f32 %v504_v50, %v1501_v18 }
  0xfd   : > { %v547_v53 = vmax.f32 %v440_v51, 0.0  ;;  %v548_v54 = vmax.f32 %v505_v52, 0.0 }
  0xff   : > { %648 = vmatmul.f32.gmra.mxu2 %v547_v53  ;;  %713 = vmatmul.f32.gmra.mxu3 %v548_v54  ;;  %v1538_v53 = vld [vmem:[%s1619_s4] ss:$0 sm:$0xff] }
 0x102   : > { %v442_v55 = vpop.f32.mrf.mxu0  ;;  %v507_v56 = vpop.f32.mrf.mxu1 }
 0x103   : > { %v443_v57 = vadd.f32 %v442_v55, %v1499_v17  ;;  %v508_v58 = vadd.f32 %v507_v56, %v1501_v18 }
 0x105   : > { %v549_v59 = vmax.f32 %v443_v57, 0.0  ;;  %v550_v60 = vmax.f32 %v508_v58, 0.0 }
 0x107   : > { %651 = vmatmul.f32.gmra.mxu2 %v549_v59  ;;  %716 = vmatmul.f32.gmra.mxu3 %v550_v60 }
 0x10a   : > { %v445_v61 = vpop.f32.mrf.mxu0  ;;  %v510_v62 = vpop.f32.mrf.mxu1 }
 0x10b   : > { %v446_v63 = vadd.f32 %v445_v61, %v1499_v17  ;;  %v511_v0 = vadd.f32 %v510_v62, %v1501_v18 }
 0x10d   : > { %v551_v1 = vmax.f32 %v446_v63, 0.0  ;;  %v552_v2 = vmax.f32 %v511_v0, 0.0 }
 0x10f   : > { %654 = vmatmul.f32.gmra.mxu2 %v551_v1  ;;  %719 = vmatmul.f32.gmra.mxu3 %v552_v2 }
 0x112   : > { %v448_v3 = vpop.f32.mrf.mxu0  ;;  %v513_v4 = vpop.f32.mrf.mxu1 }
 0x113   : > { %v449_v5 = vadd.f32 %v448_v3, %v1499_v17  ;;  %v514_v6 = vadd.f32 %v513_v4, %v1501_v18 }
 0x115   : > { %v553_v7 = vmax.f32 %v449_v5, 0.0  ;;  %v554_v8 = vmax.f32 %v514_v6, 0.0 }
 0x117   : > { %657 = vmatmul.f32.gmra.mxu2 %v553_v7  ;;  %722 = vmatmul.f32.gmra.mxu3 %v554_v8 }
 0x11a   : > { %v451_v9 = vpop.f32.mrf.mxu0  ;;  %v516_v10 = vpop.f32.mrf.mxu1 }
 0x11b   : > { %v452_v11 = vadd.f32 %v451_v9, %v1499_v17  ;;  %v517_v12 = vadd.f32 %v516_v10, %v1501_v18 }
 0x11d   : > { %v555_v13 = vmax.f32 %v452_v11, 0.0  ;;  %v556_v14 = vmax.f32 %v517_v12, 0.0 }
 0x11f   : > { %660 = vmatmul.f32.gmra.mxu2 %v555_v13  ;;  %725 = vmatmul.f32.gmra.mxu3 %v556_v14 }
 0x122   : > { %v454_v15 = vpop.f32.mrf.mxu0  ;;  %v519_v16 = vpop.f32.mrf.mxu1 }
 0x123   : > { %v455_v19 = vadd.f32 %v454_v15, %v1499_v17  ;;  %v520_v20 = vadd.f32 %v519_v16, %v1501_v18 }
 0x125   : > { %v557_v21 = vmax.f32 %v455_v19, 0.0  ;;  %v558_v22 = vmax.f32 %v520_v20, 0.0 }
 0x127   : > { %663 = vmatmul.f32.gmra.mxu2 %v557_v21  ;;  %728 = vmatmul.f32.gmra.mxu3 %v558_v22 }
 0x12a   : > { %v457_v23 = vpop.f32.mrf.mxu0  ;;  %v522_v24 = vpop.f32.mrf.mxu1 }
 0x12b   : > { %v458_v25 = vadd.f32 %v457_v23, %v1499_v17  ;;  %v523_v26 = vadd.f32 %v522_v24, %v1501_v18 }
 0x12d   : > { %v559_v27 = vmax.f32 %v458_v25, 0.0  ;;  %v560_v28 = vmax.f32 %v523_v26, 0.0 }
 0x12f   : > { %666 = vmatmul.f32.gmra.mxu2 %v559_v27  ;;  %731 = vmatmul.f32.gmra.mxu3 %v560_v28 }
 0x132   : > { %v460_v29 = vpop.f32.mrf.mxu0  ;;  %v525_v30 = vpop.f32.mrf.mxu1 }
 0x133   : > { %v461_v31 = vadd.f32 %v460_v29, %v1499_v17  ;;  %v526_v32 = vadd.f32 %v525_v30, %v1501_v18 }
 0x135   : > { %v561_v33 = vmax.f32 %v461_v31, 0.0  ;;  %v562_v34 = vmax.f32 %v526_v32, 0.0 }
 0x137   : > { %669 = vmatmul.f32.gmra.mxu2 %v561_v33  ;;  %734 = vmatmul.f32.gmra.mxu3 %v562_v34 }
 0x13a   : > { %v463_v35 = vpop.f32.mrf.mxu0  ;;  %v528_v36 = vpop.f32.mrf.mxu1 }
 0x13b   : > { %v464_v37 = vadd.f32 %v463_v35, %v1499_v17  ;;  %v529_v38 = vadd.f32 %v528_v36, %v1501_v18 }
 0x13d   : > { %v563_v39 = vmax.f32 %v464_v37, 0.0  ;;  %v564_v40 = vmax.f32 %v529_v38, 0.0 }
 0x13f   : > { %672 = vmatmul.f32.gmra.mxu2 %v563_v39  ;;  %737 = vmatmul.f32.gmra.mxu3 %v564_v40 }
 0x142   : > { %v466_v41 = vpop.f32.mrf.mxu0  ;;  %v531_v42 = vpop.f32.mrf.mxu1 }
 0x143   : > { %v467_v43 = vadd.f32 %v466_v41, %v1499_v17  ;;  %v532_v44 = vadd.f32 %v531_v42, %v1501_v18 }
 0x145   : > { %v565_v45 = vmax.f32 %v467_v43, 0.0  ;;  %v566_v46 = vmax.f32 %v532_v44, 0.0 }
 0x147   : > { %675 = vmatmul.f32.gmra.mxu2 %v565_v45  ;;  %740 = vmatmul.f32.gmra.mxu3 %v566_v46 }
 0x14a   : > { %v469_v47 = vpop.f32.mrf.mxu0  ;;  %v534_v48 = vpop.f32.mrf.mxu1 }
 0x14b   : > { %v470_v49 = vadd.f32 %v469_v47, %v1499_v17  ;;  %v535_v50 = vadd.f32 %v534_v48, %v1501_v18 }
 0x14d   : > { %v567_v51 = vmax.f32 %v470_v49, 0.0  ;;  %v568_v52 = vmax.f32 %v535_v50, 0.0 }
 0x14f   : > { %678 = vmatmul.f32.gmra.mxu2 %v567_v51  ;;  %743 = vmatmul.f32.gmra.mxu3 %v568_v52 }
 0x15a   : > { %v634_v54 = vpop.f32.mrf.mxu2  ;;  %v699_v55 = vpop.f32.mrf.mxu3 }
 0x15b   : > { %v700_v56 = vadd.f32 %v699_v55, %v634_v54 }
 0x15d   : > { %v802_v57 = vadd.f32 %v1538_v53, %v700_v56 }
 0x15f   : > { %818 = vst [vmem:[%s1543_s3] sm:$0xff] %v802_v57 }
 0x162   : > { %v637_v17 = vpop.f32.mrf.mxu2  ;;  %v702_v18 = vpop.f32.mrf.mxu3 }
 0x163   : > { %v703_v58 = vadd.f32 %v702_v18, %v637_v17 }
 0x165   : > { %v803_v59 = vadd.f32 %v1538_v53, %v703_v58 }
 0x167   : > { %819 = vst [vmem:[%s1543_s3 + $0x8] sm:$0xff] %v803_v59 }
 0x16a   : > { %v640_v60 = vpop.f32.mrf.mxu2  ;;  %v705_v61 = vpop.f32.mrf.mxu3 }
 0x16b   : > { %v706_v62 = vadd.f32 %v705_v61, %v640_v60 }
 0x16d   : > { %v804_v63 = vadd.f32 %v1538_v53, %v706_v62 }
 0x16f   : > { %820 = vst [vmem:[%s1543_s3 + $0x10] sm:$0xff] %v804_v63 }
 0x172   : > { %v643_v0 = vpop.f32.mrf.mxu2  ;;  %v708_v1 = vpop.f32.mrf.mxu3 }
 0x173   : > { %v709_v2 = vadd.f32 %v708_v1, %v643_v0 }
 0x175   : > { %v805_v3 = vadd.f32 %v1538_v53, %v709_v2 }
 0x177   : > { %821 = vst [vmem:[%s1543_s3 + $0x18] sm:$0xff] %v805_v3 }
 0x17a   : > { %v646_v4 = vpop.f32.mrf.mxu2  ;;  %v711_v5 = vpop.f32.mrf.mxu3 }
 0x17b   : > { %v712_v6 = vadd.f32 %v711_v5, %v646_v4 }
 0x17d   : > { %v806_v7 = vadd.f32 %v1538_v53, %v712_v6 }
 0x17f   : > { %822 = vst [vmem:[%s1543_s3 + $0x20] sm:$0xff] %v806_v7 }
 0x182   : > { %v649_v8 = vpop.f32.mrf.mxu2  ;;  %v714_v9 = vpop.f32.mrf.mxu3 }
 0x183   : > { %v715_v10 = vadd.f32 %v714_v9, %v649_v8 }
 0x185   : > { %v807_v11 = vadd.f32 %v1538_v53, %v715_v10 }
 0x187   : > { %823 = vst [vmem:[%s1543_s3 + $0x28] sm:$0xff] %v807_v11 }
 0x18a   : > { %v652_v12 = vpop.f32.mrf.mxu2  ;;  %v717_v13 = vpop.f32.mrf.mxu3 }
 0x18b   : > { %v718_v14 = vadd.f32 %v717_v13, %v652_v12 }
 0x18d   : > { %v808_v15 = vadd.f32 %v1538_v53, %v718_v14 }
 0x18f   : > { %824 = vst [vmem:[%s1543_s3 + $0x30] sm:$0xff] %v808_v15 }
 0x192   : > { %v655_v16 = vpop.f32.mrf.mxu2  ;;  %v720_v19 = vpop.f32.mrf.mxu3 }
 0x193   : > { %v721_v20 = vadd.f32 %v720_v19, %v655_v16 }
 0x195   : > { %v809_v21 = vadd.f32 %v1538_v53, %v721_v20 }
 0x197   : > { %825 = vst [vmem:[%s1543_s3 + $0x38] sm:$0xff] %v809_v21 }
 0x19a   : > { %v658_v22 = vpop.f32.mrf.mxu2  ;;  %v723_v23 = vpop.f32.mrf.mxu3 }
 0x19b   : > { %v724_v24 = vadd.f32 %v723_v23, %v658_v22 }
 0x19d   : > { %v810_v25 = vadd.f32 %v1538_v53, %v724_v24 }
 0x19f   : > { %826 = vst [vmem:[%s1543_s3 + $0x40] sm:$0xff] %v810_v25 }
 0x1a2   : > { %v661_v26 = vpop.f32.mrf.mxu2  ;;  %v726_v27 = vpop.f32.mrf.mxu3 }
 0x1a3   : > { %v727_v28 = vadd.f32 %v726_v27, %v661_v26 }
 0x1a5   : > { %v811_v29 = vadd.f32 %v1538_v53, %v727_v28 }
 0x1a7   : > { %827 = vst [vmem:[%s1543_s3 + $0x48] sm:$0xff] %v811_v29 }
 0x1aa   : > { %v664_v30 = vpop.f32.mrf.mxu2  ;;  %v729_v31 = vpop.f32.mrf.mxu3 }
 0x1ab   : > { %v730_v32 = vadd.f32 %v729_v31, %v664_v30 }
 0x1ad   : > { %v812_v33 = vadd.f32 %v1538_v53, %v730_v32 }
 0x1af   : > { %828 = vst [vmem:[%s1543_s3 + $0x50] sm:$0xff] %v812_v33 }
 0x1b2   : > { %v667_v34 = vpop.f32.mrf.mxu2  ;;  %v732_v35 = vpop.f32.mrf.mxu3 }
 0x1b3   : > { %v733_v36 = vadd.f32 %v732_v35, %v667_v34 }
 0x1b5   : > { %v813_v37 = vadd.f32 %v1538_v53, %v733_v36 }
 0x1b7   : > { %829 = vst [vmem:[%s1543_s3 + $0x58] sm:$0xff] %v813_v37 }
 0x1ba   : > { %v670_v38 = vpop.f32.mrf.mxu2  ;;  %v735_v39 = vpop.f32.mrf.mxu3 }
 0x1bb   : > { %v736_v40 = vadd.f32 %v735_v39, %v670_v38 }
 0x1bd   : > { %v814_v41 = vadd.f32 %v1538_v53, %v736_v40 }
 0x1bf   : > { %830 = vst [vmem:[%s1543_s3 + $0x60] sm:$0xff] %v814_v41 }
 0x1c2   : > { %v673_v42 = vpop.f32.mrf.mxu2  ;;  %v738_v43 = vpop.f32.mrf.mxu3 }
 0x1c3   : > { %v739_v44 = vadd.f32 %v738_v43, %v673_v42 }
 0x1c5   : > { %v815_v45 = vadd.f32 %v1538_v53, %v739_v44 }
 0x1c7   : > { %831 = vst [vmem:[%s1543_s3 + $0x68] sm:$0xff] %v815_v45 }
 0x1ca   : > { %v676_v46 = vpop.f32.mrf.mxu2  ;;  %v741_v47 = vpop.f32.mrf.mxu3 }
 0x1cb   : > { %v742_v48 = vadd.f32 %v741_v47, %v676_v46 }
 0x1cd   : > { %v816_v49 = vadd.f32 %v1538_v53, %v742_v48 }
 0x1cf   : > { %832 = vst [vmem:[%s1543_s3 + $0x70] sm:$0xff] %v816_v49 }
 0x1d2   : > { %v679_v50 = vpop.f32.mrf.mxu2  ;;  %v744_v51 = vpop.f32.mrf.mxu3 }
 0x1d3   : > { %v745_v52 = vadd.f32 %v744_v51, %v679_v50 }
 0x1d5   : > { %v817_v54 = vadd.f32 %v1538_v53, %v745_v52 }
 0x1d7   : > { %833 = vst [vmem:[%s1543_s3 + $0x78] sm:$0xff] %v817_v54 }
 0x1d8   : > { %1236 = shalt.err (!%p1233_p0)
}
 0x1d9   : > { %s1308_s10 = smov 128   ;;  %s1309_s11 = smov 8  }
 0x1da   : > { %1003 = dma.vmem_to_hbm [thread:$0]  (%p1432_p3), %s848_s7, 2048, %s850_s16, %s835_s25, %s1308_s10, %s1308_s10, %s1309_s11  }
 0x1db PF: > { %s864_s1 = sand.u32 1, %s1279_s18   ;;  %p1020_p5 = pnand %p972_p11, %p1389_p6 }
 0x1dc   : > { %s865_s2 = scalar_lea.sflag [#allocation5], %s864_s1 }
 0x1dd   : > { %p1021_p7 = pneg %p1020_p5 }
 0x1df   : > { %1274 = dma.done.wait (%p1021_p7), %s865_s2, 2048  }
 0x1e0   : > { %1276 = vsyncadd (%p1021_p7), %s865_s2, 4294965248  ;;  %s23_s23 = sadd.s32 1, %s1299_s23   ;;  %s1639_s18 = smov %s1283_s19 }
 0x1e1   : > { %p20_p9 = scmp.ge.s32.totalorder %s23_s23, 4   ;;  %s1640_s19 = smov %s1287_s20 }
 0x1e2   : > { %s1641_s20 = smov %s1448_s27  ;;  %s1642_s21 = smov %s1295_s22 }
 0x1e3   : > { %s1643_s22 = smov %s1645_s15  ;;  %22 = sbr.rel (!%p20_p9) target bundleno = 12 (0xc), region = 108 }
 0x1e8   :  { %871 = vsyncpa [#allocation4], 1 }
 0x1e9   :  { %873 = vsyncpa [#allocation4 + $0x1], 1 }
 0x1ea   :  { %874 = vsyncpa [#allocation7], 1 }
 0x1eb   :  { %875 = vsyncpa [#allocation10], 1 }
 0x1ec   :  { %876 = vsyncpa [#allocation5], 1 }
 0x1ed   :  { %878 = vsyncpa [#allocation5 + $0x1], 1 }

</bundles_post_ra>
